<compile_context>
chip_gen: v6e
topology: v6e:2x2x1
jax: 0.10.0
libtpu: 0.0.40
codegen_flags: <defaults>
</compile_context>

<pallas_src>
import functools

import jax
import jax.numpy as jnp
from jax.experimental import pallas as pl
from jax.experimental.pallas import tpu as pltpu

_H1, _H2, _H3 = 512, 256, 128


def _round_up(n, m):
    return ((n + m - 1) // m) * m


def _mlp_kernel(x_ref, w1_ref, b1_ref, w2_ref, b2_ref, w3_ref, b3_ref,
                w4_ref, b4_ref, o_ref):
    # Per-tile cast to bf16 (no-op if x is already bf16). All MXU matmuls
    # accumulate in f32; bias add / ReLU stay fused on the VPU.
    h = x_ref[...].astype(jnp.bfloat16)
    # Layer 1
    h = jnp.dot(h, w1_ref[...], preferred_element_type=jnp.float32)
    h = jnp.maximum(h + b1_ref[...], 0.0).astype(jnp.bfloat16)
    # Layer 2
    h = jnp.dot(h, w2_ref[...], preferred_element_type=jnp.float32)
    h = jnp.maximum(h + b2_ref[...], 0.0).astype(jnp.bfloat16)
    # Layer 3
    h = jnp.dot(h, w3_ref[...], preferred_element_type=jnp.float32)
    h = jnp.maximum(h + b3_ref[...], 0.0)            # (bb, 128) f32
    # Layer 4 (128 -> 1): VPU broadcast-multiply against the native (1, 128)
    # weight row + lane reduction (XLU slot, hidden under MXU slack). Avoids
    # an M=1 MXU push / hidden transpose; (bb, 1) writeback is negligible.
    logits = jnp.sum(h * w4_ref[...], axis=-1, keepdims=True) + b4_ref[...]
    o_ref[...] = jax.nn.sigmoid(logits)              # (bb, 1) f32


def _pick_config(B, F, x_itemsize, block_b=None):
    """Pick (batch tile, vmem_limit_bytes) from the chip's VMEM capacity."""
    try:
        vmem = int(pltpu.get_tpu_info().vmem_capacity_bytes)
    except Exception:
        vmem = 64 * 1024 * 1024                       # v7x floor if query fails
    budget = max(32 * 1024 * 1024, min((3 * vmem) // 4, 112 * 1024 * 1024))
    # Grid-invariant VMEM: double-buffered bf16 weights + f32 biases/row.
    w_bytes = 2 * (2 * (F * _H1 + _H1 * _H2 + _H2 * _H3)
                   + 4 * (2 * _H3 + _H1 + _H2 + 1))
    # Per-batch-row VMEM: double-buffered x tile, its bf16 in-kernel copy,
    # f32+bf16 activation intermediates, double-buffered f32 output column.
    per_row = 2 * F * x_itemsize + 2 * F + 8 * (_H1 + _H2 + _H3) + 2 * 4
    bb_vmem = max(8, (9 * max(budget - w_bytes, 0)) // (10 * per_row))
    bb_max = max(8, min(block_b if block_b is not None else 2048, bb_vmem))
    steps = max(1, pl.cdiv(B, bb_max))
    steps = max(steps, min(4, pl.cdiv(B, 8)))         # >=4 steps when B allows
    if steps > 1 and steps % 2:
        steps += 1                                    # even split for v7x's 2 TCs
    bb = max(8, _round_up(pl.cdiv(B, steps), 8))
    return int(bb), int(budget)


@functools.partial(jax.jit, static_argnames=("block_b", "vmem_limit"))
def _forward(x, params, *, block_b, vmem_limit):
    w1, b1, w2, b2, w3, b3, w4, b4 = params
    B, F = x.shape
    bb = block_b
    num_blocks = pl.cdiv(B, bb)

    full = lambda rows, cols: pl.BlockSpec((rows, cols), lambda i: (0, 0))

    cost = pl.CostEstimate(
        flops=2 * B * (F * _H1 + _H1 * _H2 + _H2 * _H3 + _H3),
        transcendentals=B,
        bytes_accessed=(B * F * x.dtype.itemsize
                        + 2 * (F * _H1 + _H1 * _H2 + _H2 * _H3)
                        + 4 * (2 * _H3 + _H1 + _H2 + 1)
                        + 4 * B),
    )

    out = pl.pallas_call(
        _mlp_kernel,
        out_shape=jax.ShapeDtypeStruct((B, 1), jnp.float32),
        grid_spec=pltpu.PrefetchScalarGridSpec(
            num_scalar_prefetch=0,
            grid=(num_blocks,),
            in_specs=[
                pl.BlockSpec((bb, F), lambda i: (i, 0)),   # batch tile of x
                full(F, _H1), full(1, _H1),                # layer 1 (grid-invariant)
                full(_H1, _H2), full(1, _H2),              # layer 2
                full(_H2, _H3), full(1, _H3),              # layer 3
                full(1, _H3), full(1, 1),                  # layer 4 row + bias
            ],
            out_specs=pl.BlockSpec((bb, 1), lambda i: (i, 0)),
        ),
        compiler_params=pltpu.CompilerParams(
            dimension_semantics=("parallel",),             # megacore-shard batch
            vmem_limit_bytes=vmem_limit),
        cost_estimate=cost,
    )(x, w1, b1, w2, b2, w3, b3, w4, b4)
    return out[:, 0]


def my_discriminator_forward(x, params, block_b=None):
    """Forward pass of MyDiscriminator. x: (B, F) -> (B,) f32."""
    B, F = x.shape
    bb, vmem_limit = _pick_config(B, F, x.dtype.itemsize, block_b)
    return _forward(x, params, block_b=bb, vmem_limit=vmem_limit)


def init_params(key, in_features):
    """nn.Linear-shaped params. Layers 1-3: weight (in, out) bf16, bias (1, out)
    f32. Layer 4: native (1, 128) row kept in f32, bias (1, 1) f32."""
    dims = [(in_features, _H1), (_H1, _H2), (_H2, _H3), (_H3, 1)]
    params = []
    for fan_in, fan_out in dims:
        key, kw, kb = jax.random.split(key, 3)
        bound = 1.0 / float(fan_in) ** 0.5
        w = jax.random.uniform(kw, (fan_in, fan_out), jnp.float32, -bound, bound)
        b = jax.random.uniform(kb, (1, fan_out), jnp.float32, -bound, bound)
        if fan_out == 1:
            params.append(w.T.astype(jnp.float32))         # (1, 128) f32 row
        else:
            params.append(w.astype(jnp.bfloat16))
        params.append(b.astype(jnp.float32))
    return tuple(params)


def reference_forward(x, params):
    """Pure-JAX reference mirroring the kernel's dtype flow (bf16 matmuls,
    f32 accumulation; bf16 weights are an intentional precision choice)."""
    w1, b1, w2, b2, w3, b3, w4, b4 = params
    h = x.astype(jnp.bfloat16)
    h = jnp.maximum(jnp.dot(h, w1, preferred_element_type=jnp.float32) + b1, 0.0)
    h = jnp.maximum(jnp.dot(h.astype(jnp.bfloat16), w2,
                            preferred_element_type=jnp.float32) + b2, 0.0)
    h = jnp.maximum(jnp.dot(h.astype(jnp.bfloat16), w3,
                            preferred_element_type=jnp.float32) + b3, 0.0)
    logits = jnp.sum(h * w4, axis=-1, keepdims=True) + b4
    return jax.nn.sigmoid(logits)[:, 0]


if __name__ == "__main__":
    key = jax.random.PRNGKey(0)
    # Small, module-consistent shapes. B is deliberately not a multiple of the
    # tile so the partial-tail-block path is exercised (bb -> 64, 4 grid steps).
    B, F = 250, 512
    kx, kp = jax.random.split(key)
    x = jax.random.normal(kx, (B, F), jnp.float32)
    params = init_params(kp, F)

    out = my_discriminator_forward(x, params)
    jax.block_until_ready(out)

    ref = reference_forward(x, params)
    assert out.shape == (B,), out.shape
    err = float(jnp.max(jnp.abs(out - ref)))
    assert jnp.allclose(out, ref, atol=2e-2, rtol=2e-2), err
    print("KERNEL_OK")
</pallas_src>

<mosaic_0001>
module attributes {stable_mosaic.version = 11 : i64} {
  func.func @_mlp_kernel(%arg0: i32, %arg1: memref<64x512xf32, #tpu.memory_space<vmem>>, %arg2: memref<512x512xbf16, #tpu.memory_space<vmem>>, %arg3: memref<1x512xf32, #tpu.memory_space<vmem>>, %arg4: memref<512x256xbf16, #tpu.memory_space<vmem>>, %arg5: memref<1x256xf32, #tpu.memory_space<vmem>>, %arg6: memref<256x128xbf16, #tpu.memory_space<vmem>>, %arg7: memref<1x128xf32, #tpu.memory_space<vmem>>, %arg8: memref<1x128xf32, #tpu.memory_space<vmem>>, %arg9: memref<1x1xf32, #tpu.memory_space<vmem>>, %arg10: memref<64x1xf32, #tpu.memory_space<vmem>>) attributes {dimension_semantics = [#tpu.dimension_semantics<parallel>], iteration_bounds = array<i64: 4>, scalar_prefetch = 0 : i64, scratch_operands = 0 : i64, tpu.core_type = #tpu.core_type<tc>, window_params = [{transform_indices = @transform_0, window_bounds = array<i64: 64, 512>}, {pipeline_mode = #tpu.pipeline_mode<synchronous>, transform_indices = @transform_1, window_bounds = array<i64: 512, 512>}, {pipeline_mode = #tpu.pipeline_mode<synchronous>, transform_indices = @transform_2, window_bounds = array<i64: 1, 512>}, {pipeline_mode = #tpu.pipeline_mode<synchronous>, transform_indices = @transform_3, window_bounds = array<i64: 512, 256>}, {pipeline_mode = #tpu.pipeline_mode<synchronous>, transform_indices = @transform_4, window_bounds = array<i64: 1, 256>}, {pipeline_mode = #tpu.pipeline_mode<synchronous>, transform_indices = @transform_5, window_bounds = array<i64: 256, 128>}, {pipeline_mode = #tpu.pipeline_mode<synchronous>, transform_indices = @transform_6, window_bounds = array<i64: 1, 128>}, {pipeline_mode = #tpu.pipeline_mode<synchronous>, transform_indices = @transform_7, window_bounds = array<i64: 1, 128>}, {pipeline_mode = #tpu.pipeline_mode<synchronous>, transform_indices = @transform_8, window_bounds = array<i64: 1, 1>}, {transform_indices = @transform_9, window_bounds = array<i64: 64, 1>}]} {
    %c0 = arith.constant 0 : index
    %c0_0 = arith.constant 0 : index
    %0 = vector.load %arg1[%c0, %c0_0] : memref<64x512xf32, #tpu.memory_space<vmem>>, vector<64x512xf32>
    %1 = arith.truncf %0 : vector<64x512xf32> to vector<64x512xbf16>
    %c0_1 = arith.constant 0 : index
    %c0_2 = arith.constant 0 : index
    %2 = vector.load %arg2[%c0_1, %c0_2] : memref<512x512xbf16, #tpu.memory_space<vmem>>, vector<512x512xbf16>
    %cst = arith.constant dense<0.000000e+00> : vector<64x512xf32>
    %3 = tpu.matmul %1, %2, %cst {dimension_numbers = #tpu.dot_dimension_numbers<[1], [0], [0], [1], [0, 0, 1, 1], [], []>} : vector<64x512xbf16>, vector<512x512xbf16>, vector<64x512xf32> -> vector<64x512xf32>
    %c0_3 = arith.constant 0 : index
    %c0_4 = arith.constant 0 : index
    %4 = vector.load %arg3[%c0_3, %c0_4] : memref<1x512xf32, #tpu.memory_space<vmem>>, vector<1x512xf32>
    %5 = vector.broadcast %4 : vector<1x512xf32> to vector<64x512xf32>
    %6 = arith.addf %3, %5 : vector<64x512xf32>
    %cst_5 = arith.constant 0.000000e+00 : f32
    %7 = vector.broadcast %cst_5 : f32 to vector<64x512xf32>
    %8 = arith.maximumf %6, %7 : vector<64x512xf32>
    %9 = arith.truncf %8 : vector<64x512xf32> to vector<64x512xbf16>
    %c0_6 = arith.constant 0 : index
    %c0_7 = arith.constant 0 : index
    %10 = vector.load %arg4[%c0_6, %c0_7] : memref<512x256xbf16, #tpu.memory_space<vmem>>, vector<512x256xbf16>
    %cst_8 = arith.constant dense<0.000000e+00> : vector<64x256xf32>
    %11 = tpu.matmul %9, %10, %cst_8 {dimension_numbers = #tpu.dot_dimension_numbers<[1], [0], [0], [1], [0, 0, 1, 1], [], []>} : vector<64x512xbf16>, vector<512x256xbf16>, vector<64x256xf32> -> vector<64x256xf32>
    %c0_9 = arith.constant 0 : index
    %c0_10 = arith.constant 0 : index
    %12 = vector.load %arg5[%c0_9, %c0_10] : memref<1x256xf32, #tpu.memory_space<vmem>>, vector<1x256xf32>
    %13 = vector.broadcast %12 : vector<1x256xf32> to vector<64x256xf32>
    %14 = arith.addf %11, %13 : vector<64x256xf32>
    %cst_11 = arith.constant 0.000000e+00 : f32
    %15 = vector.broadcast %cst_11 : f32 to vector<64x256xf32>
    %16 = arith.maximumf %14, %15 : vector<64x256xf32>
    %17 = arith.truncf %16 : vector<64x256xf32> to vector<64x256xbf16>
    %c0_12 = arith.constant 0 : index
    %c0_13 = arith.constant 0 : index
    %18 = vector.load %arg6[%c0_12, %c0_13] : memref<256x128xbf16, #tpu.memory_space<vmem>>, vector<256x128xbf16>
    %cst_14 = arith.constant dense<0.000000e+00> : vector<64x128xf32>
    %19 = tpu.matmul %17, %18, %cst_14 {dimension_numbers = #tpu.dot_dimension_numbers<[1], [0], [0], [1], [0, 0, 1, 1], [], []>} : vector<64x256xbf16>, vector<256x128xbf16>, vector<64x128xf32> -> vector<64x128xf32>
    %c0_15 = arith.constant 0 : index
    %c0_16 = arith.constant 0 : index
    %20 = vector.load %arg7[%c0_15, %c0_16] : memref<1x128xf32, #tpu.memory_space<vmem>>, vector<1x128xf32>
    %21 = vector.broadcast %20 : vector<1x128xf32> to vector<64x128xf32>
    %22 = arith.addf %19, %21 : vector<64x128xf32>
    %cst_17 = arith.constant 0.000000e+00 : f32
    %23 = vector.broadcast %cst_17 : f32 to vector<64x128xf32>
    %24 = arith.maximumf %22, %23 : vector<64x128xf32>
    %c0_18 = arith.constant 0 : index
    %c0_19 = arith.constant 0 : index
    %25 = vector.load %arg8[%c0_18, %c0_19] : memref<1x128xf32, #tpu.memory_space<vmem>>, vector<1x128xf32>
    %26 = vector.broadcast %25 : vector<1x128xf32> to vector<64x128xf32>
    %27 = arith.mulf %24, %26 : vector<64x128xf32>
    %cst_20 = arith.constant dense<0.000000e+00> : vector<64xf32>
    %28 = vector.multi_reduction <add>, %27, %cst_20 [1] : vector<64x128xf32> to vector<64xf32>
    %29 = vector.shape_cast %28 : vector<64xf32> to vector<64x1xf32>
    %c0_21 = arith.constant 0 : index
    %c0_22 = arith.constant 0 : index
    %30 = vector.load %arg9[%c0_21, %c0_22] : memref<1x1xf32, #tpu.memory_space<vmem>>, vector<1x1xf32>
    %31 = vector.broadcast %30 : vector<1x1xf32> to vector<64x1xf32>
    %32 = arith.addf %29, %31 : vector<64x1xf32>
    %33 = arith.negf %32 : vector<64x1xf32>
    %34 = math.exp %33 : vector<64x1xf32>
    %cst_23 = arith.constant 1.000000e+00 : f32
    %35 = vector.broadcast %cst_23 : f32 to vector<64x1xf32>
    %36 = arith.addf %35, %34 : vector<64x1xf32>
    %37 = arith.divf %35, %36 : vector<64x1xf32>
    %c0_24 = arith.constant 0 : index
    %c0_25 = arith.constant 0 : index
    %38 = vector.load %arg10[%c0_24, %c0_25] : memref<64x1xf32, #tpu.memory_space<vmem>>, vector<64x1xf32>
    tpu.vector_store %arg10[%c0_24, %c0_25], %37 {strides = array<i32>} : memref<64x1xf32, #tpu.memory_space<vmem>>, vector<64x1xf32>,
    return
  }
  func.func @transform_0(%arg0: i32) -> (i32, i32) {
    %c0_i32 = arith.constant 0 : i32
    %c0_i32_0 = arith.constant 0 : i32
    return %arg0, %c0_i32 : i32, i32
  }
  func.func @transform_1(%arg0: i32) -> (i32, i32) {
    %c0_i32 = arith.constant 0 : i32
    %c0_i32_0 = arith.constant 0 : i32
    %c0_i32_1 = arith.constant 0 : i32
    return %c0_i32, %c0_i32_0 : i32, i32
  }
  func.func @transform_2(%arg0: i32) -> (i32, i32) {
    %c0_i32 = arith.constant 0 : i32
    %c0_i32_0 = arith.constant 0 : i32
    %c0_i32_1 = arith.constant 0 : i32
    return %c0_i32, %c0_i32_0 : i32, i32
  }
  func.func @transform_3(%arg0: i32) -> (i32, i32) {
    %c0_i32 = arith.constant 0 : i32
    %c0_i32_0 = arith.constant 0 : i32
    %c0_i32_1 = arith.constant 0 : i32
    return %c0_i32, %c0_i32_0 : i32, i32
  }
  func.func @transform_4(%arg0: i32) -> (i32, i32) {
    %c0_i32 = arith.constant 0 : i32
    %c0_i32_0 = arith.constant 0 : i32
    %c0_i32_1 = arith.constant 0 : i32
    return %c0_i32, %c0_i32_0 : i32, i32
  }
  func.func @transform_5(%arg0: i32) -> (i32, i32) {
    %c0_i32 = arith.constant 0 : i32
    %c0_i32_0 = arith.constant 0 : i32
    %c0_i32_1 = arith.constant 0 : i32
    return %c0_i32, %c0_i32_0 : i32, i32
  }
  func.func @transform_6(%arg0: i32) -> (i32, i32) {
    %c0_i32 = arith.constant 0 : i32
    %c0_i32_0 = arith.constant 0 : i32
    %c0_i32_1 = arith.constant 0 : i32
    return %c0_i32, %c0_i32_0 : i32, i32
  }
  func.func @transform_7(%arg0: i32) -> (i32, i32) {
    %c0_i32 = arith.constant 0 : i32
    %c0_i32_0 = arith.constant 0 : i32
    %c0_i32_1 = arith.constant 0 : i32
    return %c0_i32, %c0_i32_0 : i32, i32
  }
  func.func @transform_8(%arg0: i32) -> (i32, i32) {
    %c0_i32 = arith.constant 0 : i32
    %c0_i32_0 = arith.constant 0 : i32
    %c0_i32_1 = arith.constant 0 : i32
    return %c0_i32, %c0_i32_0 : i32, i32
  }
  func.func @transform_9(%arg0: i32) -> (i32, i32) {
    %c0_i32 = arith.constant 0 : i32
    %c0_i32_0 = arith.constant 0 : i32
    return %arg0, %c0_i32 : i32, i32
  }
}

</mosaic_0001>

<bundles_post_ra>
// kernel: _forward.1
= control target key start
LH: loop header
LB: loop body
LE: loop exit
PB: predicated region body
PF: predicated region fallthrough
CT: control target
= control target key end

     0   :  { %s3840_s0 = inlined_call_operand.hbm [shape: f32[250,512], index: 0, kind: input, shape index: {}]   ;;  %s3841_s1 = inlined_call_operand.hbm [shape: bf16[512,512], index: 1, kind: input, shape index: {}]   ;;  %s3842_s2 = inlined_call_operand.vmem [shape: f32[1,512], index: 2, kind: input, shape index: {}]   ;;  %s3843_s3 = inlined_call_operand.hbm [shape: bf16[512,256], index: 3, kind: input, shape index: {}]   ;;  %s3844_s4 = inlined_call_operand.vmem [shape: f32[1,256], index: 4, kind: input, shape index: {}]   ;;  %s3845_s5 = inlined_call_operand.hbm [shape: bf16[256,128], index: 5, kind: input, shape index: {}]   ;;  %s3846_s6 = inlined_call_operand.vmem [shape: f32[1,128], index: 6, kind: input, shape index: {}]   ;;  %s3847_s7 = inlined_call_operand.vmem [shape: f32[1,128], index: 7, kind: input, shape index: {}]   ;;  %s3848_s8 = inlined_call_operand.<no memory space> [shape: f32[1,1], index: 8, kind: input, shape index: {}]   ;;  %s3849_s9 = inlined_call_operand.vmem [shape: f32[250,1], index: 9, kind: output, shape index: {}]  }
   0x1   :  { %v14_v0 = vstv %s3848_s8 }
   0x2   :  { %15 = vst [vmem:[#allocation2] sm:$0x1] %v14_v0 }
   0x3   :  { %16 = vsyncpa [#allocation4], 0 }
   0x4   :  { %18 = vsyncpa [#allocation4 + $0x1], 0 }
   0x5   :  { %19 = vsyncpa [#allocation6], 0 }
   0x6   :  { %20 = vsyncpa [#allocation9], 0  ;;  %s3480_s11 = smov 0   ;;  %s3482_s12 = smov 0  }
   0x7   :  { %s3484_s13 = smov 0   ;;  %s3486_s14 = smov 0  }
   0x8 LB: > { %s2554_s8 = sadd.s32 4294967295, %s3413_s14   ;;  %p46_p0 = scmp.ne.s32.totalorder %s3405_s12, %s3401_s11  ;;  %s3413_s14 = sphi %s3486_s14, %s3865_s14   ;;  %s3409_s13 = sphi %s3484_s13, %s3864_s13   ;;  %s3405_s12 = sphi %s3482_s12, %s3863_s12   ;;  %s3401_s11 = sphi %s3480_s11, %s3862_s11  }
   0x9   : > { %p3502_p1 = scmp.eq.s32.totalorder %s2554_s8, 0  ;;  %p2556_p2 = scmp.ge.s32.totalorder %s3413_s14, 1 }
   0xa   : > { %p251_p3 = scmp.lt.s32.totalorder %s3413_s14, 5  ;;  %s3415_s18 = smov [#allocation5]  }
   0xb   : > { %s3854_s15 = scalar_select %p3502_p1, 1, 0 }
   0xc   : > { %p3510_p4 = por %p3502_p1, %p46_p0  ;;  %p3514_p5 = pnand %p2556_p2, %p251_p3 }
   0xd   : > { %s263_s19 = sshll.u32 %s3415_s18, 4  ;;  %s3416_s21 = smov [#allocation7]   ;;  %s264_s19 = int_to_ptr.vmem [resolvable:$true] %s263_s19 }
   0xe   : > { %s3855_s16 = scalar_select %p3510_p4, 1, 0 }
   0xf   : > { %s3856_s17 = scalar_select %p3514_p5, 1, 0 }
  0x10   : > { %p2865_p6 = pneg %p3514_p5  ;;  %s279_s22 = sshll.u32 %s3416_s21, 4  ;;  %s280_s22 = int_to_ptr.vmem [resolvable:$true] %s279_s22 }
  0x11   : > { %s3276_s23 = scalar_lea.vmem %s264_s19, 16384  ;;  %p3284_p12 = scmp.lt.s32.totalorder %s264_s19, %s264_s19 }
  0x12   : > { %p3522_p7 = pnand %p2865_p6, %p3502_p1  ;;  %p3277_p9 = scmp.ne.s32.totalorder %s264_s19, %s3276_s23 }
  0x13   : > { %p3285_p13 = scmp.lt.s32.totalorder %s3276_s23, %s3276_s23 }
  0x14   : > { %p3267_p8 = pneg %p3522_p7 }
  0x15   : > { %p3286_p0 = por %p3285_p13, %p3284_p12 }
  0x16   : > { %p3279_p10 = pnand %p3277_p9, %p3267_p8 }
  0x18   : > { %p3280_p11 = pneg %p3279_p10 }
  0x1a   : > { %p3287_p2 = pnand %p3286_p0, %p3280_p11 }
  0x1c   : > { %3290 = shalt.err (!%p3287_p2)
}
  0x1d   : > { %s3417_s24 = smov 256   ;;  %s3418_s25 = smov 16  }
  0x1e   : > { %2868 = dma.hbm_to_vmem [thread:$0]  (!%p3522_p7), %s3841_s1, 16384, %s264_s19, [#allocation6], %s3417_s24, %s3417_s24, %s3418_s25  }
  0x1f   : > { %s3302_s28 = scalar_lea.vmem %s280_s22, 8192  ;;  %p3310_p10 = scmp.lt.s32.totalorder %s280_s22, %s280_s22 }
  0x20   : > { %p3303_p3 = scmp.ne.s32.totalorder %s280_s22, %s3302_s28  ;;  %p3311_p1 = scmp.lt.s32.totalorder %s3302_s28, %s3302_s28 }
  0x22   : > { %p3305_p6 = pnand %p3303_p3, %p3267_p8  ;;  %p3312_p12 = por %p3311_p1, %p3310_p10 }
  0x24   : > { %p3306_p9 = pneg %p3305_p6 }
  0x26   : > { %p3313_p11 = pnand %p3312_p12, %p3306_p9 }
  0x28   : > { %3316 = shalt.err (!%p3313_p11)
}
  0x29   : > { %s3419_s29 = smov 128   ;;  %s3420_s30 = smov 8  }
  0x2a   : > { %2871 = dma.hbm_to_vmem [thread:$0]  (!%p3522_p7), %s3843_s3, 8192, %s280_s22, [#allocation6], %s3419_s29, %s3419_s29, %s3420_s30  }
  0x2b   : > { %s3421_s18 = smov [#allocation8]  }
  0x2c   : > { %s295_s19 = sshll.u32 %s3421_s18, 4  ;;  %s296_s19 = int_to_ptr.vmem [resolvable:$true] %s295_s19 }
  0x2d   : > { %s3328_s21 = scalar_lea.vmem %s296_s19, 2048  ;;  %p3336_p2 = scmp.lt.s32.totalorder %s296_s19, %s296_s19 }
  0x2e   : > { %p3329_p13 = scmp.ne.s32.totalorder %s296_s19, %s3328_s21  ;;  %p3337_p3 = scmp.lt.s32.totalorder %s3328_s21, %s3328_s21 }
  0x30   : > { %p3331_p0 = pnand %p3329_p13, %p3267_p8  ;;  %p3338_p6 = por %p3337_p3, %p3336_p2 }
  0x32   : > { %p3332_p1 = pneg %p3331_p0 }
  0x34   : > { %p3339_p9 = pnand %p3338_p6, %p3332_p1 }
  0x36   : > { %3342 = shalt.err (!%p3339_p9)
}
  0x37   : > { %s3422_s23 = smov 64   ;;  %s3423_s22 = smov 4  }
  0x38   : > { %2874 = dma.hbm_to_vmem [thread:$0]  (!%p3522_p7), %s3845_s5, 2048, %s296_s19, [#allocation9], %s3422_s23, %s3422_s23, %s3423_s22  }
  0x39   : > { %s3553_s26 = sadd.s32 1, %s3413_s14   ;;  %s33_s28 = sadd.s32 1, %s3409_s13 }
  0x3a   : > { %s30_s27 = ssub.s32 %s3413_s14, %s3553_s26  ;;  %p40_p10 = scmp.ne.s32.totalorder %s3409_s13, %s3405_s12 }
  0x3b   : > { %p31_p8 = scmp.eq.s32.totalorder %s30_s27, 0  ;;  %p41_p12 = scmp.eq.s32.totalorder %s3413_s14, 0 }
  0x3c   : > { %p2882_p11 = scmp.lt.s32.totalorder %s3413_s14, 4  ;;  %s318_s30 = sand.u32 1, %s3409_s13  }
  0x3d   : > { %s3563_s29 = scalar_select %p31_p8, %s3409_s13, %s33_s28  }
  0x3e   : > { %p42_p13 = por %p41_p12, %p40_p10  ;;  %s2561_s10 = sshll.u32 %s318_s30, 8 }
  0x3f   : > { %s2794_s11 = sshll.u32 %s3413_s14, 12  ;;  %s322_s19 = scalar_lea.vmem [#allocation3], %s2561_s10 }
  0x40   : > { %s3570_s21 = scalar_lea.hbm %s3840_s0, %s2794_s11  ;;  %s330_s23 = sshll.u32 %s322_s19, 4  ;;  %s3572_s23 = int_to_ptr.vmem [resolvable:$true] %s330_s23 }
  0x41   : > { %p3574_p7 = pnand %p2882_p11, %p42_p13  ;;  %s3578_s24 = scalar_lea.sflag [#allocation4], %s318_s30 }
  0x42   : > { %s3343_s25 = scalar_lea.hbm %s3570_s21, 4096  ;;  %s3348_s10 = scalar_lea.hbm %s3840_s0, 16384 }
  0x43   : > { %p3344_p0 = scmp.ne.s32.totalorder %s3570_s21, %s3343_s25  ;;  %p3345_p1 = pneg %p3574_p7 }
  0x44   : > { %p3349_p6 = scmp.lt.s32.totalorder %s3570_s21, %s3840_s0  ;;  %p3350_p9 = scmp.lt.s32.totalorder %s3348_s10, %s3343_s25 }
  0x45   : > { %p3346_p2 = pnand %p3345_p1, %p3344_p0 }
  0x46   : > { %p3351_p8 = por %p3350_p9, %p3349_p6 }
  0x47   : > { %p3347_p3 = pneg %p3346_p2 }
  0x49   : > { %p3352_p10 = pnand %p3351_p8, %p3347_p3 }
  0x4b   : > { %3355 = shalt.err (!%p3352_p10)
}
  0x4c   : > { %s3356_s30 = scalar_lea.vmem %s3572_s23, 4096  ;;  %s3424_s18 = smov [#allocation3]  }
  0x4d   : > { %p3357_p12 = scmp.ne.s32.totalorder %s3572_s23, %s3356_s30  ;;  %s3361_s19 = sshll.u32 %s3424_s18, 4  ;;  %s3362_s19 = int_to_ptr.vmem [resolvable:$false] %s3361_s19 }
  0x4e   : > { %s3363_s27 = scalar_lea.vmem %s3362_s19, 8192  ;;  %p3364_p0 = scmp.lt.s32.totalorder %s3572_s23, %s3362_s19 }
  0x4f   : > { %p3359_p11 = pnand %p3357_p12, %p3345_p1  ;;  %p3365_p2 = scmp.lt.s32.totalorder %s3363_s27, %s3356_s30 }
  0x51   : > { %p3360_p13 = pneg %p3359_p11  ;;  %p3366_p4 = por %p3365_p2, %p3364_p0 }
  0x53   : > { %p3367_p5 = pnand %p3366_p4, %p3360_p13 }
  0x55   : > { %3370 = shalt.err (!%p3367_p5)
}
  0x56   : > { %s3425_s25 = smov 512   ;;  %s3426_s28 = smov 32  }
  0x57   : > { %2878 = dma.hbm_to_vmem [thread:$0]  (!%p3574_p7), %s3570_s21, 4096, %s3572_s23, %s3578_s24, %s3425_s25, %s3425_s25, %s3426_s28  }
  0x58   : > { %p3859_p1 = scmp.ne.s32.totalorder %s3856_s17, 0 }
  0x59   : > { %s344_s10 = sand.u32 (!%p3859_p1), 1, %s3405_s12   ;;  %p3860_p4 = scmp.ne.s32.totalorder (!%p3859_p1), %s3855_s16, 0 }
  0x5a   : > { %342 = sbr.rel (%p3859_p1) target bundleno = 1049 (0x419), region = 56  ;;  %s2566_s11 = sshll.u32 (!%p3859_p1), %s344_s10, 8 }
  0x5b   : > { %s345_s20 = scalar_lea.sflag (!%p3859_p1), [#allocation4], %s344_s10  ;;  %s3602_s30 = scalar_lea.vmem (!%p3859_p1), [#allocation3], %s2566_s11 }
  0x5f   : > { %3388 = dma.done.wait (%p3860_p4), %s345_s20, 4096  }
  0x60   : > { %3390 = vsyncadd (%p3860_p4), %s345_s20, 4294963200  ;;  %p3861_p5 = scmp.ne.s32.totalorder %s3854_s15, 0 }
  0x62   : > { %3392 = dma.done.wait (%p3861_p5), [#allocation6], 24576  }
  0x63   : > { %3394 = vsyncadd (%p3861_p5), [#allocation6], 4294942720 }
  0x64   : > { %3396 = dma.done.wait (%p3861_p5), [#allocation9], 2048  }
  0x65   : > { %3398 = vsyncadd (%p3861_p5), [#allocation9], 4294965248  ;;  %v2929_v1 = vld [vmem:[#allocation5 + $0xe4] ss:$16 sps:$4 sm:$0xff]   ;;  %v2933_v3 = vld [vmem:[#allocation5 + $0xe0] ss:$16 sps:$4 sm:$0xff]  }
  0x66   : > { %v2931_v2 = vld [vmem:[#allocation5 + $0x2e4] ss:$16 sps:$4 sm:$0xff]   ;;  %1241 = vmatprep.subr.bf16.mxu0 %v2929_v1  ;;  %v2934_v4 = vld [vmem:[#allocation5 + $0x2e0] ss:$16 sps:$4 sm:$0xff]   ;;  %v404_v47 = vld [vmem:[%s3602_s30 + $0x8] sm:$0xff]  ;;  %s2570_s19 = sshll.u32 %s2554_s8, 3 }
  0x67   : > { %1314 = vmatprep.subr.bf16.mxu1 %v2931_v2  ;;  %v2935_v5 = vld [vmem:[#allocation5 + $0xc4] ss:$16 sps:$4 sm:$0xff]   ;;  %1242 = vmatpush1.bf16.msra.mxu0 %v2933_v3  ;;  %v2939_v7 = vld [vmem:[#allocation5 + $0xc0] ss:$16 sps:$4 sm:$0xff]   ;;  %v408_v48 = vld [vmem:[%s3602_s30 + $0x28] sm:$0xff]  ;;  %p397_p7 = scmp.lt.s32.totalorder %s2570_s19, 31 }
  0x68   : > { %1315 = vmatpush1.bf16.msra.mxu1 %v2934_v4  ;;  %v2937_v6 = vld [vmem:[#allocation5 + $0x2c4] ss:$16 sps:$4 sm:$0xff]   ;;  %1243 = vmatprep.subr.bf16.mxu0 %v2935_v5  ;;  %v2940_v8 = vld [vmem:[#allocation5 + $0x2c0] ss:$16 sps:$4 sm:$0xff]   ;;  %v406_v49 = vld [vmem:[%s3602_s30 + $0x18] sm:$0xff]  ;;  %v3620_v54 = vpack.c.bf16 %v408_v48, %v404_v47  ;;  %vm2449_vm0 = vcmask 7168  }
  0x69   : > { %1316 = vmatprep.subr.bf16.mxu1 %v2937_v6  ;;  %v2941_v9 = vld [vmem:[#allocation5 + $0xa4] ss:$16 sps:$4 sm:$0xff]   ;;  %v2945_v11 = vld [vmem:[#allocation5 + $0xa0] ss:$16 sps:$4 sm:$0xff]   ;;  %v410_v50 = vld [vmem:[%s3602_s30 + $0x38] sm:$0xff]  ;;  %s3867_s19 = smov (!%p397_p7, %s2570_s19), 31 }
  0x6a   : > { %v2943_v10 = vld [vmem:[#allocation5 + $0x2a4] ss:$16 sps:$4 sm:$0xff]   ;;  %v2946_v12 = vld [vmem:[#allocation5 + $0x2a0] ss:$16 sps:$4 sm:$0xff]   ;;  %v3622_v55 = vpack.c.bf16 %v410_v50, %v406_v49  ;;  %1273 = vmatprep.mubr.bf16.mxu0 %v3620_v54  ;;  %v3051_v47 = vld [vmem:[#allocation5 + $0x6c] ss:$16 sps:$4 sm:$0xff]  }
  0x6b   : > { %1244 = vmatpush1.bf16.msra.mxu0 %v2939_v7  ;;  %v2947_v13 = vld [vmem:[#allocation5 + $0x84] ss:$16 sps:$4 sm:$0xff]   ;;  %v2951_v15 = vld [vmem:[#allocation5 + $0x80] ss:$16 sps:$4 sm:$0xff]   ;;  %v3054_v48 = vld [vmem:[#allocation5 + $0x26c] ss:$16 sps:$4 sm:$0xff]  }
  0x6c   : > { %1317 = vmatpush1.bf16.msra.mxu1 %v2940_v8  ;;  %1245 = vmatprep.subr.bf16.mxu0 %v2941_v9  ;;  %v2949_v14 = vld [vmem:[#allocation5 + $0x284] ss:$16 sps:$4 sm:$0xff]   ;;  %v2952_v16 = vld [vmem:[#allocation5 + $0x280] ss:$16 sps:$4 sm:$0xff]   ;;  %s2571_s14 = sshll.u32 %s3867_s19, 3 }
  0x6d   : > { %1318 = vmatprep.subr.bf16.mxu1 %v2943_v10  ;;  %v2953_v17 = vld [vmem:[#allocation5 + $0x64] ss:$16 sps:$4 sm:$0xff]   ;;  %v2957_v19 = vld [vmem:[#allocation5 + $0x60] ss:$16 sps:$4 sm:$0xff]   ;;  %1346 = vmatprep.mubr.bf16.mxu1 %v3622_v55  ;;  %s3809_s25 = scalar_lea.vmem %s3849_s9, %s2571_s14 }
  0x6e   : > { %v2955_v18 = vld [vmem:[#allocation5 + $0x264] ss:$16 sps:$4 sm:$0xff]   ;;  %v2958_v20 = vld [vmem:[#allocation5 + $0x260] ss:$16 sps:$4 sm:$0xff]  }
  0x6f   : > { %1246 = vmatpush1.bf16.msra.mxu0 %v2945_v11  ;;  %v2959_v21 = vld [vmem:[#allocation5 + $0x44] ss:$16 sps:$4 sm:$0xff]   ;;  %v2963_v23 = vld [vmem:[#allocation5 + $0x40] ss:$16 sps:$4 sm:$0xff]   ;;  %v3027_v11 = vld [vmem:[#allocation5 + $0xec] ss:$16 sps:$4 sm:$0xff]  }
  0x70   : > { %1319 = vmatpush1.bf16.msra.mxu1 %v2946_v12  ;;  %1247 = vmatprep.subr.bf16.mxu0 %v2947_v13  ;;  %v2961_v22 = vld [vmem:[#allocation5 + $0x244] ss:$16 sps:$4 sm:$0xff]   ;;  %v2964_v24 = vld [vmem:[#allocation5 + $0x240] ss:$16 sps:$4 sm:$0xff]   ;;  %v3030_v12 = vld [vmem:[#allocation5 + $0x2ec] ss:$16 sps:$4 sm:$0xff]  }
  0x71   : > { %1320 = vmatprep.subr.bf16.mxu1 %v2949_v14  ;;  %v2965_v25 = vld [vmem:[#allocation5 + $0x24] ss:$16 sps:$4 sm:$0xff]   ;;  %v2969_v27 = vld [vmem:[#allocation5 + $0x20] ss:$16 sps:$4 sm:$0xff]  }
  0x72   : > { %v2967_v26 = vld [vmem:[#allocation5 + $0x224] ss:$16 sps:$4 sm:$0xff]   ;;  %v2970_v28 = vld [vmem:[#allocation5 + $0x220] ss:$16 sps:$4 sm:$0xff]  }
  0x73   : > { %1248 = vmatpush1.bf16.msra.mxu0 %v2951_v15  ;;  %v2971_v29 = vld [vmem:[#allocation5 + $0x4] ss:$16 sps:$4 sm:$0xff]   ;;  %v2975_v31 = vld [vmem:[#allocation5] ss:$16 sps:$4 sm:$0xff]   ;;  %v3025_v15 = vld [vmem:[#allocation5 + $0xe8] ss:$16 sps:$4 sm:$0xff]  }
  0x74   : > { %1321 = vmatpush1.bf16.msra.mxu1 %v2952_v16  ;;  %1249 = vmatprep.subr.bf16.mxu0 %v2953_v17  ;;  %v2973_v30 = vld [vmem:[#allocation5 + $0x204] ss:$16 sps:$4 sm:$0xff]   ;;  %v2976_v32 = vld [vmem:[#allocation5 + $0x200] ss:$16 sps:$4 sm:$0xff]   ;;  %v3028_v16 = vld [vmem:[#allocation5 + $0x2e8] ss:$16 sps:$4 sm:$0xff]  }
  0x75   : > { %1322 = vmatprep.subr.bf16.mxu1 %v2955_v18  ;;  %v2977_v33 = vld [vmem:[#allocation5 + $0x1e4] ss:$16 sps:$4 sm:$0xff]   ;;  %v2981_v35 = vld [vmem:[#allocation5 + $0x1e0] ss:$16 sps:$4 sm:$0xff]   ;;  %v3033_v17 = vld [vmem:[#allocation5 + $0xcc] ss:$16 sps:$4 sm:$0xff]  }
  0x76   : > { %v2979_v34 = vld [vmem:[#allocation5 + $0x3e4] ss:$16 sps:$4 sm:$0xff]   ;;  %v2982_v36 = vld [vmem:[#allocation5 + $0x3e0] ss:$16 sps:$4 sm:$0xff]   ;;  %v412_v18 = vld [vmem:[%s3602_s30 + $0x48] sm:$0xff] }
  0x77   : > { %1250 = vmatpush1.bf16.msra.mxu0 %v2957_v19  ;;  %v2983_v37 = vld [vmem:[#allocation5 + $0x1c4] ss:$16 sps:$4 sm:$0xff]   ;;  %v2987_v39 = vld [vmem:[#allocation5 + $0x1c0] ss:$16 sps:$4 sm:$0xff]   ;;  %v416_v19 = vld [vmem:[%s3602_s30 + $0x68] sm:$0xff] }
  0x78   : > { %1323 = vmatpush1.bf16.msra.mxu1 %v2958_v20  ;;  %1251 = vmatprep.subr.bf16.mxu0 %v2959_v21  ;;  %v2985_v38 = vld [vmem:[#allocation5 + $0x3c4] ss:$16 sps:$4 sm:$0xff]   ;;  %v2988_v40 = vld [vmem:[#allocation5 + $0x3c0] ss:$16 sps:$4 sm:$0xff]   ;;  %v3036_v20 = vld [vmem:[#allocation5 + $0x2cc] ss:$16 sps:$4 sm:$0xff]  }
  0x79   : > { %1324 = vmatprep.subr.bf16.mxu1 %v2961_v22  ;;  %v2989_v41 = vld [vmem:[#allocation5 + $0x1a4] ss:$16 sps:$4 sm:$0xff]   ;;  %v2993_v43 = vld [vmem:[#allocation5 + $0x1a0] ss:$16 sps:$4 sm:$0xff]   ;;  %v414_v21 = vld [vmem:[%s3602_s30 + $0x58] sm:$0xff] }
  0x7a   : > { %v2991_v42 = vld [vmem:[#allocation5 + $0x3a4] ss:$16 sps:$4 sm:$0xff]   ;;  %v2994_v44 = vld [vmem:[#allocation5 + $0x3a0] ss:$16 sps:$4 sm:$0xff]   ;;  %v418_v22 = vld [vmem:[%s3602_s30 + $0x78] sm:$0xff] }
  0x7b   : > { %1252 = vmatpush1.bf16.msra.mxu0 %v2963_v23  ;;  %v2995_v45 = vld [vmem:[#allocation5 + $0x184] ss:$16 sps:$4 sm:$0xff]   ;;  %v2999_v51 = vld [vmem:[#allocation5 + $0x180] ss:$16 sps:$4 sm:$0xff]   ;;  %v3031_v23 = vld [vmem:[#allocation5 + $0xc8] ss:$16 sps:$4 sm:$0xff]  }
  0x7c   : > { %1325 = vmatpush1.bf16.msra.mxu1 %v2964_v24  ;;  %1253 = vmatprep.subr.bf16.mxu0 %v2965_v25  ;;  %v2997_v46 = vld [vmem:[#allocation5 + $0x384] ss:$16 sps:$4 sm:$0xff]   ;;  %v3000_v52 = vld [vmem:[#allocation5 + $0x380] ss:$16 sps:$4 sm:$0xff]   ;;  %v3034_v24 = vld [vmem:[#allocation5 + $0x2c8] ss:$16 sps:$4 sm:$0xff]   ;;  %v3638_v25 = vpack.c.bf16 %v416_v19, %v412_v18 }
  0x7d   : > { %1326 = vmatprep.subr.bf16.mxu1 %v2967_v26  ;;  %v3001_v53 = vld [vmem:[#allocation5 + $0x164] ss:$16 sps:$4 sm:$0xff]   ;;  %v3005_v57 = vld [vmem:[#allocation5 + $0x160] ss:$16 sps:$4 sm:$0xff]   ;;  %v3640_v26 = vpack.c.bf16 %v418_v22, %v414_v21  ;;  %v3072_v18 = vld [vmem:[#allocation5 + $0x20c] ss:$16 sps:$4 sm:$0xff]  }
  0x7e   : > { %v3003_v56 = vld [vmem:[#allocation5 + $0x364] ss:$16 sps:$4 sm:$0xff]   ;;  %v3006_v58 = vld [vmem:[#allocation5 + $0x360] ss:$16 sps:$4 sm:$0xff]   ;;  %v3067_v19 = vld [vmem:[#allocation5 + $0x8] ss:$16 sps:$4 sm:$0xff]  }
  0x7f   : > { %1254 = vmatpush1.bf16.msra.mxu0 %v2969_v27  ;;  %v3007_v59 = vld [vmem:[#allocation5 + $0x144] ss:$16 sps:$4 sm:$0xff]   ;;  %v3011_v61 = vld [vmem:[#allocation5 + $0x140] ss:$16 sps:$4 sm:$0xff]   ;;  %v3039_v27 = vld [vmem:[#allocation5 + $0xac] ss:$16 sps:$4 sm:$0xff]  }
  0x80   : > { %1327 = vmatpush1.bf16.msra.mxu1 %v2970_v28  ;;  %1255 = vmatprep.subr.bf16.mxu0 %v2971_v29  ;;  %v3009_v60 = vld [vmem:[#allocation5 + $0x344] ss:$16 sps:$4 sm:$0xff]   ;;  %v3012_v62 = vld [vmem:[#allocation5 + $0x340] ss:$16 sps:$4 sm:$0xff]   ;;  %v3042_v28 = vld [vmem:[#allocation5 + $0x2ac] ss:$16 sps:$4 sm:$0xff]  }
  0x81   : > { %1328 = vmatprep.subr.bf16.mxu1 %v2973_v30  ;;  %v3013_v63 = vld [vmem:[#allocation5 + $0x124] ss:$16 sps:$4 sm:$0xff]   ;;  %v3017_v1 = vld [vmem:[#allocation5 + $0x120] ss:$16 sps:$4 sm:$0xff]   ;;  %v3075_v21 = vld [vmem:[#allocation5 + $0x1ec] ss:$16 sps:$4 sm:$0xff]  }
  0x82   : > { %v3015_v0 = vld [vmem:[#allocation5 + $0x324] ss:$16 sps:$4 sm:$0xff]   ;;  %v3018_v2 = vld [vmem:[#allocation5 + $0x320] ss:$16 sps:$4 sm:$0xff]   ;;  %v3078_v22 = vld [vmem:[#allocation5 + $0x3ec] ss:$16 sps:$4 sm:$0xff]  }
  0x83   : > { %1256 = vmatpush1.bf16.msra.mxu0 %v2975_v31  ;;  %v3019_v3 = vld [vmem:[#allocation5 + $0x104] ss:$16 sps:$4 sm:$0xff]   ;;  %v3023_v5 = vld [vmem:[#allocation5 + $0x100] ss:$16 sps:$4 sm:$0xff]  }
  0x84   : > { %1329 = vmatpush1.bf16.msra.mxu1 %v2976_v32  ;;  %1257 = vmatprep.subr.bf16.mxu0 %v2977_v33  ;;  %v3021_v4 = vld [vmem:[#allocation5 + $0x304] ss:$16 sps:$4 sm:$0xff]   ;;  %v3024_v6 = vld [vmem:[#allocation5 + $0x300] ss:$16 sps:$4 sm:$0xff]   ;;  %v3037_v33 = vld [vmem:[#allocation5 + $0xa8] ss:$16 sps:$4 sm:$0xff]  }
  0x85   : > { %1330 = vmatprep.subr.bf16.mxu1 %v2979_v34  ;;  %v403_v7 = vld [vmem:[%s3602_s30] sm:$0xff]  ;;  %v405_v9 = vld [vmem:[%s3602_s30 + $0x10] sm:$0xff]  ;;  %v3040_v34 = vld [vmem:[#allocation5 + $0x2a8] ss:$16 sps:$4 sm:$0xff]  }
  0x86   : > { %v407_v8 = vld [vmem:[%s3602_s30 + $0x20] sm:$0xff]  ;;  %v409_v10 = vld [vmem:[%s3602_s30 + $0x30] sm:$0xff] }
  0x87   : > { %1258 = vmatpush2.bf16.msra.mxu0 %v2981_v35  ;;  %v3630_v13 = vpack.c.bf16 %v407_v8, %v403_v7  ;;  %v3632_v14 = vpack.c.bf16 %v409_v10, %v405_v9  ;;  %v411_v29 = vld [vmem:[%s3602_s30 + $0x40] sm:$0xff]  ;;  %v413_v31 = vld [vmem:[%s3602_s30 + $0x50] sm:$0xff] }
  0x88   : > { %1331 = vmatpush2.bf16.msra.mxu1 %v2982_v36  ;;  %1259 = vmatprep.subr.bf16.mxu0 %v2983_v37  ;;  %v415_v30 = vld [vmem:[%s3602_s30 + $0x60] sm:$0xff]  ;;  %v417_v32 = vld [vmem:[%s3602_s30 + $0x70] sm:$0xff]  ;;  %v3045_v37 = vld [vmem:[#allocation5 + $0x8c] ss:$16 sps:$4 sm:$0xff]  }
  0x89   : > { %1332 = vmatprep.subr.bf16.mxu1 %v2985_v38  ;;  %v3650_v35 = vpack.c.bf16 %v415_v30, %v411_v29  ;;  %v3652_v36 = vpack.c.bf16 %v417_v32, %v413_v31  ;;  %v420_v38 = vld [vmem:[%s3602_s30 + $0x88] sm:$0xff]  ;;  %v419_v49 = vld [vmem:[%s3602_s30 + $0x80] sm:$0xff]  ;;  %v429_v9 = vld [vmem:[%s3602_s30 + $0xd0] sm:$0xff] }
  0x8a   : > { %v423_v50 = vld [vmem:[%s3602_s30 + $0xa0] sm:$0xff]  ;;  %v433_v10 = vld [vmem:[%s3602_s30 + $0xf0] sm:$0xff]  ;;  %v3079_v29 = vld [vmem:[#allocation5 + $0x1c8] ss:$16 sps:$4 sm:$0xff]  }
  0x8b   : > { %1260 = vmatpush2.bf16.msra.mxu0 %v2987_v39  ;;  %v424_v39 = vld [vmem:[%s3602_s30 + $0xa8] sm:$0xff]  ;;  %v427_v7 = vld [vmem:[%s3602_s30 + $0xc0] sm:$0xff] }
  0x8c   : > { %1333 = vmatpush2.bf16.msra.mxu1 %v2988_v40  ;;  %1261 = vmatprep.subr.bf16.mxu0 %v2989_v41  ;;  %v3048_v40 = vld [vmem:[#allocation5 + $0x28c] ss:$16 sps:$4 sm:$0xff]   ;;  %v431_v8 = vld [vmem:[%s3602_s30 + $0xe0] sm:$0xff]  ;;  %v3082_v30 = vld [vmem:[#allocation5 + $0x3c8] ss:$16 sps:$4 sm:$0xff]  }
  0x8d   : > { %1334 = vmatprep.subr.bf16.mxu1 %v2991_v42  ;;  %v422_v41 = vld [vmem:[%s3602_s30 + $0x98] sm:$0xff] }
  0x8e   : > { %v426_v42 = vld [vmem:[%s3602_s30 + $0xb8] sm:$0xff] }
  0x8f   : > { %1262 = vmatpush2.bf16.msra.mxu0 %v2993_v43  ;;  %v3043_v43 = vld [vmem:[#allocation5 + $0x88] ss:$16 sps:$4 sm:$0xff]   ;;  %v3087_v31 = vld [vmem:[#allocation5 + $0x1ac] ss:$16 sps:$4 sm:$0xff]  }
  0x90   : > { %1335 = vmatpush2.bf16.msra.mxu1 %v2994_v44  ;;  %1263 = vmatprep.subr.bf16.mxu0 %v2995_v45  ;;  %v3046_v44 = vld [vmem:[#allocation5 + $0x288] ss:$16 sps:$4 sm:$0xff]   ;;  %v3658_v45 = vpack.c.bf16 %v424_v39, %v420_v38  ;;  %v3090_v32 = vld [vmem:[#allocation5 + $0x3ac] ss:$16 sps:$4 sm:$0xff]  }
  0x91   : > { %1336 = vmatprep.subr.bf16.mxu1 %v2997_v46  ;;  %v3660_v46 = vpack.c.bf16 %v426_v42, %v422_v41  ;;  %v3094_v38 = vld [vmem:[#allocation5 + $0x388] ss:$16 sps:$4 sm:$0xff]   ;;  %v3099_v39 = vld [vmem:[#allocation5 + $0x16c] ss:$16 sps:$4 sm:$0xff]  }
  0x92   : > { %v3097_v41 = vld [vmem:[#allocation5 + $0x168] ss:$16 sps:$4 sm:$0xff]  }
  0x93   : > { %1264 = vmatpush2.bf16.msra.mxu0 %v2999_v51  ;;  %v421_v51 = vld [vmem:[%s3602_s30 + $0x90] sm:$0xff]  ;;  %v3100_v42 = vld [vmem:[#allocation5 + $0x368] ss:$16 sps:$4 sm:$0xff]  }
  0x94   : > { %1337 = vmatpush2.bf16.msra.mxu1 %v3000_v52  ;;  %1265 = vmatprep.subr.bf16.mxu0 %v3001_v53  ;;  %v425_v52 = vld [vmem:[%s3602_s30 + $0xb0] sm:$0xff]  ;;  %v3049_v53 = vld [vmem:[#allocation5 + $0x68] ss:$16 sps:$4 sm:$0xff]  }
  0x95   : > { %1338 = vmatprep.subr.bf16.mxu1 %v3003_v56  ;;  %v3052_v56 = vld [vmem:[#allocation5 + $0x268] ss:$16 sps:$4 sm:$0xff]  }
  0x97   : > { %1266 = vmatpush2.bf16.msra.mxu0 %v3005_v57  ;;  %v3670_v57 = vpack.c.bf16 %v423_v50, %v419_v49  ;;  %v3111_v49 = vld [vmem:[#allocation5 + $0x12c] ss:$16 sps:$4 sm:$0xff]  }
  0x98   : > { %1339 = vmatpush2.bf16.msra.mxu1 %v3006_v58  ;;  %1267 = vmatprep.subr.bf16.mxu0 %v3007_v59  ;;  %v3672_v58 = vpack.c.bf16 %v425_v52, %v421_v51  ;;  %v3057_v59 = vld [vmem:[#allocation5 + $0x4c] ss:$16 sps:$4 sm:$0xff]   ;;  %v3109_v51 = vld [vmem:[#allocation5 + $0x128] ss:$16 sps:$4 sm:$0xff]  }
  0x99   : > { %1340 = vmatprep.subr.bf16.mxu1 %v3009_v60  ;;  %v428_v60 = vld [vmem:[%s3602_s30 + $0xc8] sm:$0xff] }
  0x9a   : > { %v3114_v50 = vld [vmem:[#allocation5 + $0x32c] ss:$16 sps:$4 sm:$0xff]   ;;  %v3112_v52 = vld [vmem:[#allocation5 + $0x328] ss:$16 sps:$4 sm:$0xff]  }
  0x9b   : > { %1268 = vmatpush2.bf16.msra.mxu0 %v3011_v61  ;;  %v432_v61 = vld [vmem:[%s3602_s30 + $0xe8] sm:$0xff] }
  0x9c   : > { %1341 = vmatpush2.bf16.msra.mxu1 %v3012_v62  ;;  %1269 = vmatprep.subr.bf16.mxu0 %v3013_v63  ;;  %v3060_v62 = vld [vmem:[#allocation5 + $0x24c] ss:$16 sps:$4 sm:$0xff]  }
  0x9d   : > { %1342 = vmatprep.subr.bf16.mxu1 %v3015_v0  ;;  %v430_v63 = vld [vmem:[%s3602_s30 + $0xd8] sm:$0xff] }
  0x9e   : > { %v434_v0 = vld [vmem:[%s3602_s30 + $0xf8] sm:$0xff] }
  0x9f   : > { %1270 = vmatpush2.bf16.msra.mxu0 %v3017_v1  ;;  %v3055_v1 = vld [vmem:[#allocation5 + $0x48] ss:$16 sps:$4 sm:$0xff]  }
  0xa0   : > { %1343 = vmatpush2.bf16.msra.mxu1 %v3018_v2  ;;  %1271 = vmatprep.subr.bf16.mxu0 %v3019_v3  ;;  %v3058_v2 = vld [vmem:[#allocation5 + $0x248] ss:$16 sps:$4 sm:$0xff]   ;;  %v3678_v3 = vpack.c.bf16 %v432_v61, %v428_v60  ;;  %v3123_v61 = vld [vmem:[#allocation7 + $0x74] ss:$8 sps:$4 sm:$0xff]  }
  0xa1   : > { %1344 = vmatprep.subr.bf16.mxu1 %v3021_v4  ;;  %v3680_v4 = vpack.c.bf16 %v434_v0, %v430_v63  ;;  %v3118_v60 = vld [vmem:[#allocation5 + $0x308] ss:$16 sps:$4 sm:$0xff]   ;;  %v3126_v63 = vld [vmem:[#allocation7 + $0x64] ss:$8 sps:$4 sm:$0xff]  }
  0xa2   : > { %v3124_v0 = vld [vmem:[#allocation7 + $0x60] ss:$8 sps:$4 sm:$0xff]  }
  0xa3   : > { %1272 = vmatpush2.bf16.msra.mxu0 %v3023_v5  ;;  %v3063_v5 = vld [vmem:[#allocation5 + $0x2c] ss:$16 sps:$4 sm:$0xff]  }
  0xa4   : > { %1345 = vmatpush2.bf16.msra.mxu1 %v3024_v6  ;;  %1387 = vmatprep.subr.bf16.mxu0 %v3027_v11  ;;  %v3066_v6 = vld [vmem:[#allocation5 + $0x22c] ss:$16 sps:$4 sm:$0xff]   ;;  %v3061_v11 = vld [vmem:[#allocation5 + $0x28] ss:$16 sps:$4 sm:$0xff]  }
  0xa5   : > { %1460 = vmatprep.subr.bf16.mxu1 %v3030_v12  ;;  %v3064_v12 = vld [vmem:[#allocation5 + $0x228] ss:$16 sps:$4 sm:$0xff]  }
  0xa6   : > { %1274 = vmatmul.mubr.bf16.vlgmr.msra.gmra.mxu0 %v3630_v13 }
  0xa7   : > { %1347 = vmatmul.mubr.bf16.vlgmr.msra.gmra.mxu1 %v3632_v14  ;;  %1388 = vmatpush1.bf16.msra.mxu0 %v3025_v15  ;;  %v3690_v15 = vpack.c.bf16 %v431_v8, %v427_v7  ;;  %v3169_v7 = vld [vmem:[#allocation7 + $0x170] ss:$8 sps:$4 sm:$0xff]   ;;  %v3177_v8 = vld [vmem:[#allocation7 + $0x154] ss:$8 sps:$4 sm:$0xff]  }
  0xa8   : > { %1461 = vmatpush1.bf16.msra.mxu1 %v3028_v16  ;;  %1389 = vmatprep.subr.bf16.mxu0 %v3033_v17  ;;  %v3692_v16 = vpack.c.bf16 %v433_v10, %v429_v9  ;;  %v3069_v17 = vld [vmem:[#allocation5 + $0xc] ss:$16 sps:$4 sm:$0xff]   ;;  %v3139_v9 = vld [vmem:[#allocation7 + $0x10] ss:$8 sps:$4 sm:$0xff]  }
  0xa9   : > { %1462 = vmatprep.subr.bf16.mxu1 %v3036_v20  ;;  %1283 = vmatprep.mubr.bf16.mxu0 %v3638_v25  ;;  %v3070_v20 = vld [vmem:[#allocation5 + $0x208] ss:$16 sps:$4 sm:$0xff]   ;;  %v3147_v10 = vld [vmem:[#allocation7 + $0xf4] ss:$8 sps:$4 sm:$0xff]  }
  0xaa   : > { %1356 = vmatprep.mubr.bf16.mxu1 %v3640_v26 }
  0xab   : > { %1390 = vmatpush1.bf16.msra.mxu0 %v3031_v23  ;;  %v3073_v23 = vld [vmem:[#allocation5 + $0x1e8] ss:$16 sps:$4 sm:$0xff]  }
  0xac   : > { %1463 = vmatpush1.bf16.msra.mxu1 %v3034_v24  ;;  %1391 = vmatprep.subr.bf16.mxu0 %v3039_v27  ;;  %v3076_v24 = vld [vmem:[#allocation5 + $0x3e8] ss:$16 sps:$4 sm:$0xff]   ;;  %v3081_v27 = vld [vmem:[#allocation5 + $0x1cc] ss:$16 sps:$4 sm:$0xff]  }
  0xad   : > { %1464 = vmatprep.subr.bf16.mxu1 %v3042_v28  ;;  %v3084_v28 = vld [vmem:[#allocation5 + $0x3cc] ss:$16 sps:$4 sm:$0xff]  }
  0xae   : > { %1284 = vmatmul.mubr.bf16.gmra.mxu0 %v3650_v35 }
  0xaf   : > { %1357 = vmatmul.mubr.bf16.gmra.mxu1 %v3652_v36  ;;  %1392 = vmatpush1.bf16.msra.mxu0 %v3037_v33  ;;  %v3085_v33 = vld [vmem:[#allocation5 + $0x1a8] ss:$16 sps:$4 sm:$0xff]  }
  0xb0   : > { %1465 = vmatpush1.bf16.msra.mxu1 %v3040_v34  ;;  %1393 = vmatprep.subr.bf16.mxu0 %v3045_v37  ;;  %v3096_v34 = vld [vmem:[#allocation5 + $0x38c] ss:$16 sps:$4 sm:$0xff]   ;;  %v3091_v37 = vld [vmem:[#allocation5 + $0x188] ss:$16 sps:$4 sm:$0xff]  }
  0xb1   : > { %1466 = vmatprep.subr.bf16.mxu1 %v3048_v40  ;;  %1293 = vmatprep.mubr.bf16.mxu0 %v3658_v45  ;;  %v3102_v40 = vld [vmem:[#allocation5 + $0x36c] ss:$16 sps:$4 sm:$0xff]  }
  0xb2   : > { %1366 = vmatprep.mubr.bf16.mxu1 %v3660_v46 }
  0xb3   : > { %1394 = vmatpush1.bf16.msra.mxu0 %v3043_v43  ;;  %v3105_v43 = vld [vmem:[#allocation5 + $0x14c] ss:$16 sps:$4 sm:$0xff]  }
  0xb4   : > { %1467 = vmatpush1.bf16.msra.mxu1 %v3046_v44  ;;  %1395 = vmatprep.subr.bf16.mxu0 %v3051_v47  ;;  %v3108_v44 = vld [vmem:[#allocation5 + $0x34c] ss:$16 sps:$4 sm:$0xff]   ;;  %v3103_v47 = vld [vmem:[#allocation5 + $0x148] ss:$16 sps:$4 sm:$0xff]  }
  0xb5   : > { %1468 = vmatprep.subr.bf16.mxu1 %v3054_v48  ;;  %v3106_v48 = vld [vmem:[#allocation5 + $0x348] ss:$16 sps:$4 sm:$0xff]  }
  0xb6   : > { %1294 = vmatmul.mubr.bf16.gmra.mxu0 %v3670_v57 }
  0xb7   : > { %1367 = vmatmul.mubr.bf16.gmra.mxu1 %v3672_v58  ;;  %1396 = vmatpush1.bf16.msra.mxu0 %v3049_v53  ;;  %v3117_v53 = vld [vmem:[#allocation5 + $0x10c] ss:$16 sps:$4 sm:$0xff]  }
  0xb8   : > { %1469 = vmatpush1.bf16.msra.mxu1 %v3052_v56  ;;  %1397 = vmatprep.subr.bf16.mxu0 %v3057_v59  ;;  %v3120_v56 = vld [vmem:[#allocation5 + $0x30c] ss:$16 sps:$4 sm:$0xff]   ;;  %v3115_v59 = vld [vmem:[#allocation5 + $0x108] ss:$16 sps:$4 sm:$0xff]  }
  0xb9   : > { %1470 = vmatprep.subr.bf16.mxu1 %v3060_v62  ;;  %1303 = vmatprep.mubr.bf16.mxu0 %v3678_v3  ;;  %v3121_v62 = vld [vmem:[#allocation7 + $0x70] ss:$8 sps:$4 sm:$0xff]  }
  0xba   : > { %1376 = vmatprep.mubr.bf16.mxu1 %v3680_v4 }
  0xbb   : > { %1398 = vmatpush1.bf16.msra.mxu0 %v3055_v1  ;;  %v3129_v1 = vld [vmem:[#allocation7 + $0x54] ss:$8 sps:$4 sm:$0xff]  }
  0xbc   : > { %1471 = vmatpush1.bf16.msra.mxu1 %v3058_v2  ;;  %1399 = vmatprep.subr.bf16.mxu0 %v3063_v5  ;;  %v3127_v2 = vld [vmem:[#allocation7 + $0x50] ss:$8 sps:$4 sm:$0xff]   ;;  %v3132_v5 = vld [vmem:[#allocation7 + $0x44] ss:$8 sps:$4 sm:$0xff]  }
  0xbd   : > { %1472 = vmatprep.subr.bf16.mxu1 %v3066_v6  ;;  %v3138_v6 = vld [vmem:[#allocation7 + $0x24] ss:$8 sps:$4 sm:$0xff]  }
  0xbe   : > { %1304 = vmatmul.mubr.bf16.gmra.mxu0 %v3690_v15 }
  0xbf   : > { %1377 = vmatmul.mubr.bf16.gmra.mxu1 %v3692_v16  ;;  %1400 = vmatpush1.bf16.msra.mxu0 %v3061_v11  ;;  %v3178_v11 = vld [vmem:[#allocation7 + $0x140] ss:$8 sps:$4 sm:$0xff]  }
  0xc0   : > { %1473 = vmatpush1.bf16.msra.mxu1 %v3064_v12  ;;  %1401 = vmatprep.subr.bf16.mxu0 %v3069_v17  ;;  %v3183_v12 = vld [vmem:[#allocation7 + $0x134] ss:$8 sps:$4 sm:$0xff]   ;;  %v3145_v17 = vld [vmem:[#allocation7 + $0xf0] ss:$8 sps:$4 sm:$0xff]  }
  0xc1   : > { %1474 = vmatprep.subr.bf16.mxu1 %v3072_v18  ;;  %1419 = vmatprep.mubr.bf16.mxu0 %v3620_v54  ;;  %v3088_v54 = vld [vmem:[#allocation5 + $0x3a8] ss:$16 sps:$4 sm:$0xff]   ;;  %v3150_v18 = vld [vmem:[#allocation7 + $0xe4] ss:$8 sps:$4 sm:$0xff]  }
  0xc2   : > { %1492 = vmatprep.mubr.bf16.mxu1 %v3622_v55  ;;  %v3093_v55 = vld [vmem:[#allocation5 + $0x18c] ss:$16 sps:$4 sm:$0xff]  }
  0xc3   : > { %1402 = vmatpush1.bf16.msra.mxu0 %v3067_v19  ;;  %v3181_v19 = vld [vmem:[#allocation7 + $0x130] ss:$8 sps:$4 sm:$0xff]  }
  0xc4   : > { %1475 = vmatpush1.bf16.msra.mxu1 %v3070_v20  ;;  %1403 = vmatprep.subr.bf16.mxu0 %v3075_v21  ;;  %v3153_v20 = vld [vmem:[#allocation7 + $0xd4] ss:$8 sps:$4 sm:$0xff]   ;;  %v3184_v21 = vld [vmem:[#allocation7 + $0x120] ss:$8 sps:$4 sm:$0xff]  }
  0xc5   : > { %1476 = vmatprep.subr.bf16.mxu1 %v3078_v22  ;;  %v3189_v22 = vld [vmem:[#allocation7 + $0x114] ss:$8 sps:$4 sm:$0xff]  }
  0xc7   : > { %1404 = vmatpush2.bf16.msra.mxu0 %v3073_v23  ;;  %v3151_v23 = vld [vmem:[#allocation7 + $0xd0] ss:$8 sps:$4 sm:$0xff]  }
  0xc8   : > { %1477 = vmatpush2.bf16.msra.mxu1 %v3076_v24  ;;  %1405 = vmatprep.subr.bf16.mxu0 %v3081_v27  ;;  %v3156_v24 = vld [vmem:[#allocation7 + $0xc4] ss:$8 sps:$4 sm:$0xff]   ;;  %v3187_v27 = vld [vmem:[#allocation7 + $0x110] ss:$8 sps:$4 sm:$0xff]  }
  0xc9   : > { %1478 = vmatprep.subr.bf16.mxu1 %v3084_v28  ;;  %v3192_v28 = vld [vmem:[#allocation7 + $0x104] ss:$8 sps:$4 sm:$0xff]  }
  0xcb   : > { %1406 = vmatpush2.bf16.msra.mxu0 %v3079_v29  ;;  %v3154_v29 = vld [vmem:[#allocation7 + $0xc0] ss:$8 sps:$4 sm:$0xff]  }
  0xcc   : > { %1479 = vmatpush2.bf16.msra.mxu1 %v3082_v30  ;;  %1407 = vmatprep.subr.bf16.mxu0 %v3087_v31  ;;  %v3159_v30 = vld [vmem:[#allocation7 + $0xb4] ss:$8 sps:$4 sm:$0xff]   ;;  %v3190_v31 = vld [vmem:[#allocation7 + $0x100] ss:$8 sps:$4 sm:$0xff]  }
  0xcd   : > { %1480 = vmatprep.subr.bf16.mxu1 %v3090_v32  ;;  %v3195_v32 = vld [vmem:[#allocation7 + $0x1f4] ss:$8 sps:$4 sm:$0xff]  }
  0xcf   : > { %1408 = vmatpush2.bf16.msra.mxu0 %v3085_v33  ;;  %v3157_v33 = vld [vmem:[#allocation7 + $0xb0] ss:$8 sps:$4 sm:$0xff]  }
  0xd0   : > { %1481 = vmatpush2.bf16.msra.mxu1 %v3088_v54  ;;  %1409 = vmatprep.subr.bf16.mxu0 %v3093_v55  ;;  %v3162_v54 = vld [vmem:[#allocation7 + $0xa4] ss:$8 sps:$4 sm:$0xff]   ;;  %v3193_v55 = vld [vmem:[#allocation7 + $0x1f0] ss:$8 sps:$4 sm:$0xff]  }
  0xd1   : > { %1482 = vmatprep.subr.bf16.mxu1 %v3096_v34  ;;  %v3198_v34 = vld [vmem:[#allocation7 + $0x1e4] ss:$8 sps:$4 sm:$0xff]  }
  0xd3   : > { %1410 = vmatpush2.bf16.msra.mxu0 %v3091_v37  ;;  %v3160_v37 = vld [vmem:[#allocation7 + $0xa0] ss:$8 sps:$4 sm:$0xff]  }
  0xd4   : > { %1483 = vmatpush2.bf16.msra.mxu1 %v3094_v38  ;;  %1411 = vmatprep.subr.bf16.mxu0 %v3099_v39  ;;  %v3165_v38 = vld [vmem:[#allocation7 + $0x94] ss:$8 sps:$4 sm:$0xff]   ;;  %v3196_v39 = vld [vmem:[#allocation7 + $0x1e0] ss:$8 sps:$4 sm:$0xff]  }
  0xd5   : > { %1484 = vmatprep.subr.bf16.mxu1 %v3102_v40  ;;  %v3201_v40 = vld [vmem:[#allocation7 + $0x1d4] ss:$8 sps:$4 sm:$0xff]  }
  0xd7   : > { %1412 = vmatpush2.bf16.msra.mxu0 %v3097_v41  ;;  %v3163_v41 = vld [vmem:[#allocation7 + $0x90] ss:$8 sps:$4 sm:$0xff]  }
  0xd8   : > { %1485 = vmatpush2.bf16.msra.mxu1 %v3100_v42  ;;  %1413 = vmatprep.subr.bf16.mxu0 %v3105_v43  ;;  %v3168_v42 = vld [vmem:[#allocation7 + $0x84] ss:$8 sps:$4 sm:$0xff]   ;;  %v3199_v43 = vld [vmem:[#allocation7 + $0x1d0] ss:$8 sps:$4 sm:$0xff]  }
  0xd9   : > { %1486 = vmatprep.subr.bf16.mxu1 %v3108_v44  ;;  %v3204_v44 = vld [vmem:[#allocation7 + $0x1c4] ss:$8 sps:$4 sm:$0xff]  }
  0xdb   : > { %1414 = vmatpush2.bf16.msra.mxu0 %v3103_v47  ;;  %v3166_v47 = vld [vmem:[#allocation7 + $0x80] ss:$8 sps:$4 sm:$0xff]  }
  0xdc   : > { %1487 = vmatpush2.bf16.msra.mxu1 %v3106_v48  ;;  %1415 = vmatprep.subr.bf16.mxu0 %v3111_v49  ;;  %v3202_v48 = vld [vmem:[#allocation7 + $0x1c0] ss:$8 sps:$4 sm:$0xff]   ;;  %v3207_v49 = vld [vmem:[#allocation7 + $0x1b4] ss:$8 sps:$4 sm:$0xff]  }
  0xdd   : > { %1488 = vmatprep.subr.bf16.mxu1 %v3114_v50  ;;  %v3205_v50 = vld [vmem:[#allocation7 + $0x1b0] ss:$8 sps:$4 sm:$0xff]  }
  0xdf   : > { %1416 = vmatpush2.bf16.msra.mxu0 %v3109_v51  ;;  %v3210_v51 = vld [vmem:[#allocation7 + $0x1a4] ss:$8 sps:$4 sm:$0xff]  }
  0xe0   : > { %1489 = vmatpush2.bf16.msra.mxu1 %v3112_v52  ;;  %1417 = vmatprep.subr.bf16.mxu0 %v3117_v53  ;;  %v3208_v52 = vld [vmem:[#allocation7 + $0x1a0] ss:$8 sps:$4 sm:$0xff]   ;;  %v3213_v53 = vld [vmem:[#allocation7 + $0x194] ss:$8 sps:$4 sm:$0xff]  }
  0xe1   : > { %1490 = vmatprep.subr.bf16.mxu1 %v3120_v56  ;;  %v3211_v56 = vld [vmem:[#allocation7 + $0x190] ss:$8 sps:$4 sm:$0xff]  }
  0xe3   : > { %1418 = vmatpush2.bf16.msra.mxu0 %v3115_v59  ;;  %v3216_v59 = vld [vmem:[#allocation7 + $0x184] ss:$8 sps:$4 sm:$0xff]  }
  0xe4   : > { %1491 = vmatpush2.bf16.msra.mxu1 %v3118_v60  ;;  %1977 = vmatprep.subr.bf16.mxu0 %v3123_v61  ;;  %v3214_v60 = vld [vmem:[#allocation7 + $0x180] ss:$8 sps:$4 sm:$0xff]   ;;  %v581_v61 = vlaneseq }
  0xe6   : > { %1420 = vmatmul.mubr.bf16.vlgmr.msra.gmra.mxu0 %v3630_v13  ;;  %v3130_v13 = vld [vmem:[#allocation7 + $0x40] ss:$8 sps:$4 sm:$0xff]  }
  0xe7   : > { %1493 = vmatmul.mubr.bf16.vlgmr.msra.gmra.mxu1 %v3632_v14  ;;  %1429 = vmatprep.mubr.bf16.mxu0 %v3638_v25  ;;  %v3135_v14 = vld [vmem:[#allocation7 + $0x34] ss:$8 sps:$4 sm:$0xff]   ;;  %v3133_v25 = vld [vmem:[#allocation7 + $0x30] ss:$8 sps:$4 sm:$0xff]  }
  0xe8   : > { %1502 = vmatprep.mubr.bf16.mxu1 %v3640_v26  ;;  %1978 = vmatpush1.bf16.msra.mxu0 %v3121_v62  ;;  %v3171_v26 = vld [vmem:[#allocation7 + $0x174] ss:$8 sps:$4 sm:$0xff]   ;;  %v3712_v62 = vshrl.u32 %v581_v61, 7 }
  0xe9   : > { %1979 = vmatprep.subr.bf16.mxu0 %v3126_v63  ;;  %2050 = vmatprep.subr.bf16.mxu1 %v3171_v26 }
  0xea   : > { %2051 = vmatpush1.bf16.msra.mxu1 %v3169_v7  ;;  %v587_v63 = vsub.s32 1, %v3712_v62 }
  0xec   : > { %1980 = vmatpush1.bf16.msra.mxu0 %v3124_v0  ;;  %v3718_v0 = vld [vmem:[%s3842_s2] sm:$0xf] }
  0xed   : > { %1981 = vmatprep.subr.bf16.mxu0 %v3129_v1  ;;  %v583_v1 = vsub.s32 0, %v3712_v62 }
  0xee   : > { %1430 = vmatmul.mubr.bf16.gmra.mxu0 %v3650_v35  ;;  %v3174_v35 = vld [vmem:[#allocation7 + $0x164] ss:$8 sps:$4 sm:$0xff]  }
  0xef   : > { %1503 = vmatmul.mubr.bf16.gmra.mxu1 %v3652_v36  ;;  %1439 = vmatprep.mubr.bf16.mxu0 %v3658_v45  ;;  %v3136_v36 = vld [vmem:[#allocation7 + $0x20] ss:$8 sps:$4 sm:$0xff]   ;;  %v3141_v45 = vld [vmem:[#allocation7 + $0x14] ss:$8 sps:$4 sm:$0xff]  }
  0xf0   : > { %1512 = vmatprep.mubr.bf16.mxu1 %v3660_v46  ;;  %1982 = vmatpush1.bf16.msra.mxu0 %v3127_v2  ;;  %v3172_v46 = vld [vmem:[#allocation7 + $0x160] ss:$8 sps:$4 sm:$0xff]   ;;  %v3724_v2 = vrot.slane %v3718_v0, %v587_v63 }
  0xf1   : > { %1983 = vmatprep.subr.bf16.mxu0 %v3132_v5  ;;  %2052 = vmatprep.subr.bf16.mxu1 %v3174_v35  ;;  %v3729_v5 = vrot.slane %v3718_v0, %v583_v1 }
  0xf2   : > { %2053 = vmatpush1.bf16.msra.mxu1 %v3172_v46 }
  0xf3   : > { %2054 = vmatprep.subr.bf16.mxu1 %v3177_v8 }
  0xf4   : > { %1984 = vmatpush1.bf16.msra.mxu0 %v3130_v13 }
  0xf5   : > { %1985 = vmatprep.subr.bf16.mxu0 %v3135_v14 }
  0xf6   : > { %1440 = vmatmul.mubr.bf16.gmra.mxu0 %v3670_v57  ;;  %v3144_v57 = vld [vmem:[#allocation7 + $0x4] ss:$8 sps:$4 sm:$0xff]  }
  0xf7   : > { %1513 = vmatmul.mubr.bf16.gmra.mxu1 %v3672_v58  ;;  %1449 = vmatprep.mubr.bf16.mxu0 %v3678_v3  ;;  %v3175_v58 = vld [vmem:[#allocation7 + $0x150] ss:$8 sps:$4 sm:$0xff]   ;;  %v3180_v3 = vld [vmem:[#allocation7 + $0x144] ss:$8 sps:$4 sm:$0xff]  }
  0xf8   : > { %1522 = vmatprep.mubr.bf16.mxu1 %v3680_v4  ;;  %1986 = vmatpush1.bf16.msra.mxu0 %v3133_v25  ;;  %v3142_v4 = vld [vmem:[#allocation7] ss:$8 sps:$4 sm:$0xff]  }
  0xf9   : > { %1987 = vmatprep.subr.bf16.mxu0 %v3138_v6  ;;  %2055 = vmatpush1.bf16.msra.mxu1 %v3175_v58 }
  0xfa   : > { %2056 = vmatprep.subr.bf16.mxu1 %v3180_v3 }
  0xfc   : > { %1988 = vmatpush1.bf16.msra.mxu0 %v3136_v36 }
  0xfd   : > { %1989 = vmatprep.subr.bf16.mxu0 %v3141_v45  ;;  %2057 = vmatpush1.bf16.msra.mxu1 %v3178_v11 }
  0xfe   : > { %1450 = vmatmul.mubr.bf16.gmra.mxu0 %v3690_v15  ;;  %2058 = vmatprep.subr.bf16.mxu1 %v3183_v12  ;;  %v3186_v15 = vld [vmem:[#allocation7 + $0x124] ss:$8 sps:$4 sm:$0xff]  }
  0xff   : > { %1523 = vmatmul.mubr.bf16.gmra.mxu1 %v3692_v16  ;;  %v3148_v16 = vld [vmem:[#allocation7 + $0xe0] ss:$8 sps:$4 sm:$0xff]  }
 0x100   : > { %1990 = vmatpush1.bf16.msra.mxu0 %v3139_v9 }
 0x101   : > { %1991 = vmatprep.subr.bf16.mxu0 %v3144_v57  ;;  %2059 = vmatpush1.bf16.msra.mxu1 %v3181_v19 }
 0x102   : > { %2060 = vmatprep.subr.bf16.mxu1 %v3186_v15 }
 0x104   : > { %1992 = vmatpush1.bf16.msra.mxu0 %v3142_v4 }
 0x105   : > { %1993 = vmatprep.subr.bf16.mxu0 %v3147_v10  ;;  %2061 = vmatpush1.bf16.msra.mxu1 %v3184_v21 }
 0x106   : > { %2062 = vmatprep.subr.bf16.mxu1 %v3189_v22 }
 0x108   : > { %1994 = vmatpush2.bf16.msra.mxu0 %v3145_v17 }
 0x109   : > { %1995 = vmatprep.subr.bf16.mxu0 %v3150_v18  ;;  %2063 = vmatpush1.bf16.msra.mxu1 %v3187_v27 }
 0x10a   : > { %2064 = vmatprep.subr.bf16.mxu1 %v3192_v28 }
 0x10c   : > { %1996 = vmatpush2.bf16.msra.mxu0 %v3148_v16 }
 0x10d   : > { %1997 = vmatprep.subr.bf16.mxu0 %v3153_v20  ;;  %2065 = vmatpush1.bf16.msra.mxu1 %v3190_v31 }
 0x10e   : > { %2066 = vmatprep.subr.bf16.mxu1 %v3195_v32 }
 0x110   : > { %1998 = vmatpush2.bf16.msra.mxu0 %v3151_v23 }
 0x111   : > { %1999 = vmatprep.subr.bf16.mxu0 %v3156_v24  ;;  %2067 = vmatpush2.bf16.msra.mxu1 %v3193_v55 }
 0x112   : > { %2068 = vmatprep.subr.bf16.mxu1 %v3198_v34 }
 0x114   : > { %2000 = vmatpush2.bf16.msra.mxu0 %v3154_v29 }
 0x115   : > { %2001 = vmatprep.subr.bf16.mxu0 %v3159_v30  ;;  %2069 = vmatpush2.bf16.msra.mxu1 %v3196_v39 }
 0x116   : > { %2070 = vmatprep.subr.bf16.mxu1 %v3201_v40 }
 0x118   : > { %2002 = vmatpush2.bf16.msra.mxu0 %v3157_v33 }
 0x119   : > { %2003 = vmatprep.subr.bf16.mxu0 %v3162_v54  ;;  %2071 = vmatpush2.bf16.msra.mxu1 %v3199_v43 }
 0x11a   : > { %2072 = vmatprep.subr.bf16.mxu1 %v3204_v44 }
 0x11c   : > { %2004 = vmatpush2.bf16.msra.mxu0 %v3160_v37 }
 0x11d   : > { %2005 = vmatprep.subr.bf16.mxu0 %v3165_v38  ;;  %2073 = vmatpush2.bf16.msra.mxu1 %v3202_v48 }
 0x11e   : > { %2074 = vmatprep.subr.bf16.mxu1 %v3207_v49 }
 0x120   : > { %2006 = vmatpush2.bf16.msra.mxu0 %v3163_v41 }
 0x121   : > { %2007 = vmatprep.subr.bf16.mxu0 %v3168_v42  ;;  %2075 = vmatpush2.bf16.msra.mxu1 %v3205_v50 }
 0x122   : > { %2076 = vmatprep.subr.bf16.mxu1 %v3210_v51 }
 0x124   : > { %2008 = vmatpush2.bf16.msra.mxu0 %v3166_v47 }
 0x125   : > { %2077 = vmatpush2.bf16.msra.mxu1 %v3208_v52 }
 0x126   : > { %2078 = vmatprep.subr.bf16.mxu1 %v3213_v53 }
 0x129   : > { %2079 = vmatpush2.bf16.msra.mxu1 %v3211_v56 }
 0x12a   : > { %2080 = vmatprep.subr.bf16.mxu1 %v3216_v59 }
 0x12d   : > { %2081 = vmatpush2.bf16.msra.mxu1 %v3214_v60 }
 0x166   : > { %v1275_v13 = vpop.f32.mrf.mxu0 }
 0x167   : > { %v1348_v14 = vpop.f32.mrf.mxu1  ;;  %v1276_v7 = vadd.f32 %v1275_v13, %v3729_v5 }
 0x168   : > { %v1277_v25 = vpop.f32.mrf.mxu0 }
 0x169   : > { %v1350_v26 = vpop.f32.mrf.mxu1  ;;  %v1278_v6 = vadd.f32 %v1277_v25, %v3724_v2  ;;  %v1349_v3 = vadd.f32 %v1348_v14, %v1276_v7 }
 0x16a   : > { %v1279_v35 = vpop.f32.mrf.mxu0 }
 0x16b   : > { %v1352_v36 = vpop.f32.mrf.mxu1  ;;  %v1280_v45 = vadd.f32 %v1279_v35, %v3729_v5  ;;  %v1351_v9 = vadd.f32 %v1350_v26, %v1278_v6  ;;  %v1533_v21 = vmax.f32 %v1349_v3, 0.0 }
 0x16c   : > { %v1281_v46 = vpop.f32.mrf.mxu0 }
 0x16d   : > { %v1354_v8 = vpop.f32.mrf.mxu1  ;;  %v1353_v57 = vadd.f32 %v1352_v36, %v1280_v45  ;;  %v1282_v58 = vadd.f32 %v1281_v46, %v3724_v2  ;;  %v1534_v15 = vmax.f32 %v1351_v9, 0.0 }
 0x16e   : > { %v1285_v4 = vpop.f32.mrf.mxu0 }
 0x16f   : > { %v1358_v10 = vpop.f32.mrf.mxu1  ;;  %v1355_v11 = vadd.f32 %v1354_v8, %v1282_v58  ;;  %v1286_v12 = vadd.f32 %v1285_v4, %v3729_v5  ;;  %v1537_v17 = vmax.f32 %v1353_v57, 0.0 }
 0x170   : > { %v1287_v18 = vpop.f32.mrf.mxu0 }
 0x171   : > { %v1360_v19 = vpop.f32.mrf.mxu1  ;;  %v1538_v16 = vmax.f32 %v1355_v11, 0.0  ;;  %v1288_v20 = vadd.f32 %v1287_v18, %v3724_v2  ;;  %v1359_v22 = vadd.f32 %v1358_v10, %v1286_v12  ;;  %v1565_v30 = vpack.c.bf16 %v1537_v17, %v1533_v21 }
 0x172   : > { %v1289_v23 = vpop.f32.mrf.mxu0 }
 0x173   : > { %v1362_v24 = vpop.f32.mrf.mxu1  ;;  %v1566_v27 = vpack.c.bf16 %v1538_v16, %v1534_v15  ;;  %v1290_v28 = vadd.f32 %v1289_v23, %v3729_v5  ;;  %v1361_v29 = vadd.f32 %v1360_v19, %v1288_v20  ;;  %v1541_v55 = vmax.f32 %v1359_v22, 0.0 }
 0x174   : > { %v1291_v31 = vpop.f32.mrf.mxu0 }
 0x175   : > { %v1364_v32 = vpop.f32.mrf.mxu1  ;;  %2009 = vmatprep.mubr.bf16.mxu0 %v1566_v27  ;;  %v1292_v33 = vadd.f32 %v1291_v31, %v3724_v2  ;;  %v1363_v54 = vadd.f32 %v1362_v24, %v1290_v28  ;;  %v1542_v38 = vmax.f32 %v1361_v29, 0.0  ;;  %v595_v28 = vsub.s32 3, %v3712_v62 }
 0x176   : > { %2010 = vmatmul.mubr.bf16.vlgmr.msra.gmra.mxu0 %v1565_v30  ;;  %v1295_v34 = vpop.f32.mrf.mxu0 }
 0x177   : > { %v1368_v37 = vpop.f32.mrf.mxu1  ;;  %v1545_v39 = vmax.f32 %v1363_v54, 0.0  ;;  %v1296_v40 = vadd.f32 %v1295_v34, %v3729_v5  ;;  %v1365_v41 = vadd.f32 %v1364_v32, %v1292_v33  ;;  %v3750_v29 = vrot.slane %v3718_v0, %v595_v28 }
 0x178   : > { %v1297_v42 = vpop.f32.mrf.mxu0 }
 0x179   : > { %v1370_v43 = vpop.f32.mrf.mxu1  ;;  %v1546_v44 = vmax.f32 %v1365_v41, 0.0  ;;  %v1298_v47 = vadd.f32 %v1297_v42, %v3724_v2  ;;  %v1569_v48 = vpack.c.bf16 %v1545_v39, %v1541_v55  ;;  %v1369_v49 = vadd.f32 %v1368_v37, %v1296_v40 }
 0x17a   : > { %v1299_v50 = vpop.f32.mrf.mxu0 }
 0x17b   : > { %v1372_v51 = vpop.f32.mrf.mxu1  ;;  %v1570_v52 = vpack.c.bf16 %v1546_v44, %v1542_v38  ;;  %v1300_v53 = vadd.f32 %v1299_v50, %v3729_v5  ;;  %v1371_v56 = vadd.f32 %v1370_v43, %v1298_v47  ;;  %v1549_v14 = vmax.f32 %v1369_v49, 0.0 }
 0x17c   : > { %v1301_v59 = vpop.f32.mrf.mxu0 }
 0x17d   : > { %v1374_v60 = vpop.f32.mrf.mxu1  ;;  %v1302_v61 = vadd.f32 %v1301_v59, %v3724_v2  ;;  %v1373_v13 = vadd.f32 %v1372_v51, %v1300_v53  ;;  %2019 = vmatprep.mubr.bf16.mxu0 %v1570_v52  ;;  %v1550_v6 = vmax.f32 %v1371_v56, 0.0 }
 0x17e   : > { %v1305_v25 = vpop.f32.mrf.mxu0  ;;  %2020 = vmatmul.mubr.bf16.gmra.mxu0 %v1569_v48 }
 0x17f   : > { %v1378_v26 = vpop.f32.mrf.mxu1  ;;  %v1553_v7 = vmax.f32 %v1373_v13, 0.0  ;;  %v1306_v35 = vadd.f32 %v1305_v25, %v3729_v5  ;;  %v1375_v36 = vadd.f32 %v1374_v60, %v1302_v61 }
 0x180   : > { %v1307_v45 = vpop.f32.mrf.mxu0 }
 0x181   : > { %v1380_v46 = vpop.f32.mrf.mxu1  ;;  %v1554_v8 = vmax.f32 %v1375_v36, 0.0  ;;  %v1308_v9 = vadd.f32 %v1307_v45, %v3724_v2  ;;  %v1573_v57 = vpack.c.bf16 %v1553_v7, %v1549_v14  ;;  %v1379_v58 = vadd.f32 %v1378_v26, %v1306_v35 }
 0x182   : > { %v1309_v3 = vpop.f32.mrf.mxu0 }
 0x183   : > { %v1382_v4 = vpop.f32.mrf.mxu1  ;;  %v1574_v10 = vpack.c.bf16 %v1554_v8, %v1550_v6  ;;  %v1310_v11 = vadd.f32 %v1309_v3, %v3729_v5  ;;  %v1381_v12 = vadd.f32 %v1380_v46, %v1308_v9  ;;  %v1557_v16 = vmax.f32 %v1379_v58, 0.0 }
 0x184   : > { %v1311_v17 = vpop.f32.mrf.mxu0  ;;  %v591_v5 = vsub.s32 2, %v3712_v62 }
 0x185   : > { %v1384_v18 = vpop.f32.mrf.mxu1  ;;  %v1312_v19 = vadd.f32 %v1311_v17, %v3724_v2  ;;  %v1383_v15 = vadd.f32 %v1382_v4, %v1310_v11  ;;  %2029 = vmatprep.mubr.bf16.mxu0 %v1574_v10  ;;  %v1558_v20 = vmax.f32 %v1381_v12, 0.0 }
 0x186   : > { %2030 = vmatmul.mubr.bf16.gmra.mxu0 %v1573_v57  ;;  %v3753_v2 = vrot.slane %v3718_v0, %v591_v5 }
 0x187   : > { %v1561_v21 = vmax.f32 %v1383_v15, 0.0  ;;  %v1385_v22 = vadd.f32 %v1384_v18, %v1312_v19 }
 0x189   : > { %v1562_v23 = vmax.f32 %v1385_v22, 0.0  ;;  %v1577_v24 = vpack.c.bf16 %v1561_v21, %v1557_v16 }
 0x18b   : > { %v1578_v27 = vpack.c.bf16 %v1562_v23, %v1558_v20 }
 0x18d   : > { %2039 = vmatprep.mubr.bf16.mxu0 %v1578_v27 }
 0x18e   : > { %2040 = vmatmul.mubr.bf16.gmra.mxu0 %v1577_v24 }
 0x1a6   : > { %v1421_v30 = vpop.f32.mrf.mxu0 }
 0x1a7   : > { %v1494_v31 = vpop.f32.mrf.mxu1  ;;  %v1422_v55 = vadd.f32 %v1421_v30, %v3753_v2 }
 0x1a8   : > { %v1423_v32 = vpop.f32.mrf.mxu0 }
 0x1a9   : > { %v1496_v33 = vpop.f32.mrf.mxu1  ;;  %v1424_v54 = vadd.f32 %v1423_v32, %v3750_v29  ;;  %v1495_v0 = vadd.f32 %v1494_v31, %v1422_v55 }
 0x1aa   : > { %v1425_v34 = vpop.f32.mrf.mxu0 }
 0x1ab   : > { %v1498_v37 = vpop.f32.mrf.mxu1  ;;  %v1426_v38 = vadd.f32 %v1425_v34, %v3753_v2  ;;  %v1497_v41 = vadd.f32 %v1496_v33, %v1424_v54  ;;  %v1535_v59 = vmax.f32 %v1495_v0, 0.0 }
 0x1ac   : > { %v1427_v39 = vpop.f32.mrf.mxu0 }
 0x1ad   : > { %v1500_v40 = vpop.f32.mrf.mxu1  ;;  %v1499_v42 = vadd.f32 %v1498_v37, %v1426_v38  ;;  %v1428_v43 = vadd.f32 %v1427_v39, %v3750_v29  ;;  %v1536_v52 = vmax.f32 %v1497_v41, 0.0 }
 0x1ae   : > { %v1431_v44 = vpop.f32.mrf.mxu0 }
 0x1af   : > { %v1504_v47 = vpop.f32.mrf.mxu1  ;;  %v1501_v48 = vadd.f32 %v1500_v40, %v1428_v43  ;;  %v1539_v49 = vmax.f32 %v1499_v42, 0.0  ;;  %v1432_v60 = vadd.f32 %v1431_v44, %v3753_v2 }
 0x1b0   : > { %v1433_v50 = vpop.f32.mrf.mxu0 }
 0x1b1   : > { %v1506_v51 = vpop.f32.mrf.mxu1  ;;  %v1540_v53 = vmax.f32 %v1501_v48, 0.0  ;;  %v1434_v56 = vadd.f32 %v1433_v50, %v3750_v29  ;;  %v1567_v26 = vpack.c.bf16 %v1539_v49, %v1535_v59  ;;  %v1505_v46 = vadd.f32 %v1504_v47, %v1432_v60 }
 0x1b2   : > { %v1435_v61 = vpop.f32.mrf.mxu0 }
 0x1b3   : > { %v1508_v13 = vpop.f32.mrf.mxu1  ;;  %v1568_v14 = vpack.c.bf16 %v1540_v53, %v1536_v52  ;;  %v1436_v25 = vadd.f32 %v1435_v61, %v3753_v2  ;;  %v1507_v35 = vadd.f32 %v1506_v51, %v1434_v56  ;;  %v1543_v17 = vmax.f32 %v1505_v46, 0.0  ;;  %v3226_v46 = vld [vmem:[#allocation8 + $0x18] sm:$0xff]  }
 0x1b4   : > { %v1437_v6 = vpop.f32.mrf.mxu0 }
 0x1b5   : > { %v1510_v7 = vpop.f32.mrf.mxu1  ;;  %v1509_v36 = vadd.f32 %v1508_v13, %v1436_v25  ;;  %v1438_v45 = vadd.f32 %v1437_v6, %v3750_v29  ;;  %2082 = vmatprep.mubr.bf16.mxu1 %v1568_v14  ;;  %v1544_v10 = vmax.f32 %v1507_v35, 0.0  ;;  %v3218_v25 = vld [vmem:[#allocation8 + $0x38] sm:$0xff]   ;;  %v3221_v6 = vld [vmem:[#allocation8 + $0x68] sm:$0xff]   ;;  %v3223_v35 = vld [vmem:[#allocation8 + $0x60] sm:$0xff]  }
 0x1b6   : > { %v1441_v8 = vpop.f32.mrf.mxu0  ;;  %2083 = vmatmul.mubr.bf16.vlgmr.msra.gmra.mxu1 %v1567_v26  ;;  %v3219_v26 = vld [vmem:[#allocation8 + $0x70] sm:$0xff]  }
 0x1b7   : > { %v1514_v9 = vpop.f32.mrf.mxu1  ;;  %v1511_v57 = vadd.f32 %v1510_v7, %v1438_v45  ;;  %v1547_v58 = vmax.f32 %v1509_v36, 0.0  ;;  %v1442_v18 = vadd.f32 %v1441_v8, %v3753_v2  ;;  %v3222_v7 = vld [vmem:[#allocation8 + $0x28] sm:$0xff]   ;;  %v3224_v36 = vld [vmem:[#allocation8 + $0x20] sm:$0xff]   ;;  %v3225_v45 = vld [vmem:[#allocation8 + $0x58] sm:$0xff]  }
 0x1b8   : > { %v1443_v3 = vpop.f32.mrf.mxu0  ;;  %v3227_v8 = vld [vmem:[#allocation8 + $0x50] sm:$0xff]  }
 0x1b9   : > { %v1516_v4 = vpop.f32.mrf.mxu1  ;;  %v1548_v11 = vmax.f32 %v1511_v57, 0.0  ;;  %v1444_v12 = vadd.f32 %v1443_v3, %v3750_v29  ;;  %v1571_v21 = vpack.c.bf16 %v1547_v58, %v1543_v17  ;;  %v1515_v5 = vadd.f32 %v1514_v9, %v1442_v18  ;;  %v3228_v9 = vld [vmem:[#allocation8 + $0x10] sm:$0xff]   ;;  %v3229_v57 = vld [vmem:[#allocation8 + $0x48] sm:$0xff]   ;;  %v3231_v3 = vld [vmem:[#allocation8 + $0x40] sm:$0xff]  }
 0x1ba   : > { %v1445_v19 = vpop.f32.mrf.mxu0  ;;  %v3230_v58 = vld [vmem:[#allocation8 + $0x8] sm:$0xff]  }
 0x1bb   : > { %v1518_v15 = vpop.f32.mrf.mxu1  ;;  %v1572_v16 = vpack.c.bf16 %v1548_v11, %v1544_v10  ;;  %v1446_v20 = vadd.f32 %v1445_v19, %v3753_v2  ;;  %v1517_v24 = vadd.f32 %v1516_v4, %v1444_v12  ;;  %v1551_v39 = vmax.f32 %v1515_v5, 0.0  ;;  %v3232_v4 = vld [vmem:[#allocation8] sm:$0xff]  }
 0x1bc   : > { %v1447_v22 = vpop.f32.mrf.mxu0 }
 0x1bd   : > { %v1520_v23 = vpop.f32.mrf.mxu1  ;;  %v1519_v27 = vadd.f32 %v1518_v15, %v1446_v20  ;;  %v1448_v28 = vadd.f32 %v1447_v22, %v3750_v29  ;;  %2092 = vmatprep.mubr.bf16.mxu1 %v1572_v16  ;;  %v1552_v34 = vmax.f32 %v1517_v24, 0.0  ;;  %v1645_v20 = vld [vmem:[%s3844_s4] sm:$0x3] }
 0x1be   : > { %v1451_v30 = vpop.f32.mrf.mxu0  ;;  %2093 = vmatmul.mubr.bf16.gmra.mxu1 %v1571_v21  ;;  %v3776_v22 = vrot.slane %v1645_v20, %v587_v63 }
 0x1bf   : > { %v1524_v31 = vpop.f32.mrf.mxu1  ;;  %v1521_v32 = vadd.f32 %v1520_v23, %v1448_v28  ;;  %v1555_v33 = vmax.f32 %v1519_v27, 0.0  ;;  %v1452_v40 = vadd.f32 %v1451_v30, %v3753_v2  ;;  %v3780_v23 = vrot.slane %v1645_v20, %v583_v1 }
 0x1c0   : > { %v1453_v54 = vpop.f32.mrf.mxu0 }
 0x1c1   : > { %v1526_v55 = vpop.f32.mrf.mxu1  ;;  %v1556_v37 = vmax.f32 %v1521_v32, 0.0  ;;  %v1454_v38 = vadd.f32 %v1453_v54, %v3750_v29  ;;  %v1575_v44 = vpack.c.bf16 %v1555_v33, %v1551_v39  ;;  %v1525_v51 = vadd.f32 %v1524_v31, %v1452_v40 }
 0x1c2   : > { %v1455_v41 = vpop.f32.mrf.mxu0 }
 0x1c3   : > { %v1528_v42 = vpop.f32.mrf.mxu1  ;;  %v1576_v43 = vpack.c.bf16 %v1556_v37, %v1552_v34  ;;  %v1456_v0 = vadd.f32 %v1455_v41, %v3753_v2  ;;  %v1527_v48 = vadd.f32 %v1526_v55, %v1454_v38  ;;  %v1559_v61 = vmax.f32 %v1525_v51, 0.0  ;;  %v3217_v2 = vld [vmem:[#allocation8 + $0x78] sm:$0xff]  }
 0x1c4   : > { %v1457_v47 = vpop.f32.mrf.mxu0  ;;  %2795 = vmatprep.subr.bf16.mxu0 %v3217_v2  ;;  %2835 = vmatprep.subr.bf16.mxu1 %v3217_v2 }
 0x1c5   : > { %v1529_v49 = vadd.f32 %v1528_v42, %v1456_v0  ;;  %v1458_v50 = vadd.f32 %v1457_v47, %v3750_v29  ;;  %2102 = vmatprep.mubr.bf16.mxu1 %v1576_v43  ;;  %v1530_v52 = vpop.f32.mrf.mxu1  ;;  %v1560_v59 = vmax.f32 %v1527_v48, 0.0  ;;  %2796 = vmatpush3.bf16.msra.mxu0 %v3218_v25  ;;  %v3220_v29 = vld [vmem:[#allocation8 + $0x30] sm:$0xff]  }
 0x1c6   : > { %2103 = vmatmul.mubr.bf16.gmra.mxu1 %v1575_v44  ;;  %2797 = vmatprep.subr.bf16.mxu0 %v3219_v26 }
 0x1c7   : > { %v1531_v53 = vadd.f32 %v1530_v52, %v1458_v50  ;;  %v1563_v56 = vmax.f32 %v1529_v49, 0.0  ;;  %2843 = vmatpush3.bf16.msra.mxu1 %v3218_v25 }
 0x1c8   : > { %2836 = vmatprep.subr.bf16.mxu1 %v3219_v26 }
 0x1c9   : > { %v1564_v60 = vmax.f32 %v1531_v53, 0.0  ;;  %v1579_v14 = vpack.c.bf16 %v1563_v56, %v1559_v61  ;;  %2798 = vmatpush3.bf16.msra.mxu0 %v3220_v29 }
 0x1ca   : > { %2799 = vmatprep.subr.bf16.mxu0 %v3221_v6 }
 0x1cb   : > { %v1580_v13 = vpack.c.bf16 %v1564_v60, %v1560_v59  ;;  %2844 = vmatpush3.bf16.msra.mxu1 %v3220_v29 }
 0x1cc   : > { %2837 = vmatprep.subr.bf16.mxu1 %v3221_v6 }
 0x1cd   : > { %2112 = vmatprep.mubr.bf16.mxu1 %v1580_v13  ;;  %2800 = vmatpush3.bf16.msra.mxu0 %v3222_v7 }
 0x1ce   : > { %2113 = vmatmul.mubr.bf16.gmra.mxu1 %v1579_v14  ;;  %2801 = vmatprep.subr.bf16.mxu0 %v3223_v35 }
 0x1cf   : > { %2845 = vmatpush3.bf16.msra.mxu1 %v3222_v7 }
 0x1d0   : > { %2838 = vmatprep.subr.bf16.mxu1 %v3223_v35 }
 0x1d1   : > { %2802 = vmatpush3.bf16.msra.mxu0 %v3224_v36 }
 0x1d2   : > { %2803 = vmatprep.subr.bf16.mxu0 %v3225_v45 }
 0x1d3   : > { %2846 = vmatpush3.bf16.msra.mxu1 %v3224_v36 }
 0x1d4   : > { %2839 = vmatprep.subr.bf16.mxu1 %v3225_v45 }
 0x1d5   : > { %2804 = vmatpush3.bf16.msra.mxu0 %v3226_v46 }
 0x1d6   : > { %2805 = vmatprep.subr.bf16.mxu0 %v3227_v8 }
 0x1d7   : > { %2847 = vmatpush3.bf16.msra.mxu1 %v3226_v46 }
 0x1d8   : > { %2840 = vmatprep.subr.bf16.mxu1 %v3227_v8 }
 0x1d9   : > { %2806 = vmatpush3.bf16.msra.mxu0 %v3228_v9 }
 0x1da   : > { %2807 = vmatprep.subr.bf16.mxu0 %v3229_v57 }
 0x1db   : > { %2848 = vmatpush3.bf16.msra.mxu1 %v3228_v9 }
 0x1dc   : > { %2841 = vmatprep.subr.bf16.mxu1 %v3229_v57 }
 0x1dd   : > { %2808 = vmatpush3.bf16.msra.mxu0 %v3230_v58 }
 0x1de   : > { %2809 = vmatprep.subr.bf16.mxu0 %v3231_v3 }
 0x1df   : > { %2849 = vmatpush3.bf16.msra.mxu1 %v3230_v58 }
 0x1e0   : > { %2842 = vmatprep.subr.bf16.mxu1 %v3231_v3 }
 0x1e1   : > { %2810 = vmatpush3.bf16.msra.mxu0 %v3232_v4 }
 0x1e3   : > { %2850 = vmatpush3.bf16.msra.mxu1 %v3232_v4 }
 0x236   : > { %v2011_v10 = vpop.f32.mrf.mxu0 }
 0x237   : > { %v2012_v31 = vadd.f32 %v2011_v10, %v3780_v23 }
 0x238   : > { %v2013_v11 = vpop.f32.mrf.mxu0 }
 0x239   : > { %v2014_v5 = vadd.f32 %v2013_v11, %v3776_v22 }
 0x23a   : > { %v2015_v12 = vpop.f32.mrf.mxu0 }
 0x23b   : > { %v2016_v30 = vadd.f32 %v2015_v12, %v3780_v23 }
 0x23c   : > { %v2017_v17 = vpop.f32.mrf.mxu0 }
 0x23d   : > { %v2018_v33 = vadd.f32 %v2017_v17, %v3776_v22 }
 0x23e   : > { %v2021_v18 = vpop.f32.mrf.mxu0 }
 0x23f   : > { %v2022_v48 = vadd.f32 %v2021_v18, %v3780_v23 }
 0x240   : > { %v2023_v19 = vpop.f32.mrf.mxu0 }
 0x241   : > { %v2024_v0 = vadd.f32 %v2023_v19, %v3776_v22 }
 0x242   : > { %v2025_v15 = vpop.f32.mrf.mxu0 }
 0x243   : > { %v2026_v44 = vadd.f32 %v2025_v15, %v3780_v23 }
 0x244   : > { %v2027_v16 = vpop.f32.mrf.mxu0 }
 0x245   : > { %v2028_v51 = vadd.f32 %v2027_v16, %v3776_v22 }
 0x246   : > { %v2031_v21 = vpop.f32.mrf.mxu0 }
 0x247   : > { %v2032_v45 = vadd.f32 %v2031_v21, %v3780_v23 }
 0x248   : > { %v2033_v27 = vpop.f32.mrf.mxu0 }
 0x249   : > { %v2034_v7 = vadd.f32 %v2033_v27, %v3776_v22 }
 0x24a   : > { %v2035_v63 = vpop.f32.mrf.mxu0 }
 0x24b   : > { %v2036_v35 = vadd.f32 %v2035_v63, %v3780_v23 }
 0x24c   : > { %v2037_v41 = vpop.f32.mrf.mxu0 }
 0x24d   : > { %v2038_v9 = vadd.f32 %v2037_v41, %v3776_v22 }
 0x24e   : > { %v2041_v56 = vpop.f32.mrf.mxu0 }
 0x250   : > { %v2043_v26 = vpop.f32.mrf.mxu0 }
 0x251   : > { %v2044_v21 = vadd.f32 %v2043_v26, %v3776_v22 }
 0x252   : > { %v2045_v3 = vpop.f32.mrf.mxu0 }
 0x254   : > { %v2047_v15 = vpop.f32.mrf.mxu0 }
 0x276   : > { %v2084_v24 = vpop.f32.mrf.mxu1 }
 0x277   : > { %v2085_v34 = vadd.f32 %v2084_v24, %v2012_v31  ;;  %v2046_v24 = vadd.f32 %v2045_v3, %v3780_v23  ;;  %v2048_v31 = vadd.f32 %v2047_v15, %v3776_v22  ;;  %v2764_v22 = vld [vmem:[%s3846_s6] ss:$0 sm:$0xff] }
 0x278   : > { %v2086_v28 = vpop.f32.mrf.mxu1 }
 0x279   : > { %v2087_v54 = vadd.f32 %v2086_v28, %v2014_v5  ;;  %v2123_v42 = vmax.f32 %v2085_v34, 0.0  ;;  %v2042_v28 = vadd.f32 %v2041_v56, %v3780_v23 }
 0x27a   : > { %v2088_v32 = vpop.f32.mrf.mxu1 }
 0x27b   : > { %v2089_v55 = vadd.f32 %v2088_v32, %v2016_v30  ;;  %v2124_v39 = vmax.f32 %v2087_v54, 0.0 }
 0x27c   : > { %v2090_v37 = vpop.f32.mrf.mxu1 }
 0x27d   : > { %v2091_v62 = vadd.f32 %v2090_v37, %v2018_v33  ;;  %v2125_v1 = vmax.f32 %v2089_v55, 0.0 }
 0x27e   : > { %v2094_v38 = vpop.f32.mrf.mxu1 }
 0x27f   : > { %v2126_v40 = vmax.f32 %v2091_v62, 0.0  ;;  %v2139_v49 = vpack.c.bf16 %v2125_v1, %v2123_v42  ;;  %v2095_v59 = vadd.f32 %v2094_v38, %v2022_v48 }
 0x280   : > { %v2096_v43 = vpop.f32.mrf.mxu1 }
 0x281   : > { %v2140_v47 = vpack.c.bf16 %v2126_v40, %v2124_v39  ;;  %v2097_v52 = vadd.f32 %v2096_v43, %v2024_v0  ;;  %v2127_v29 = vmax.f32 %v2095_v59, 0.0 }
 0x282   : > { %v2098_v50 = vpop.f32.mrf.mxu1 }
 0x283   : > { %v2099_v53 = vadd.f32 %v2098_v50, %v2026_v44  ;;  %2314 = vmatprep.mubr.bf16.mxu0 %v2140_v47  ;;  %v2128_v2 = vmax.f32 %v2097_v52, 0.0  ;;  %v2781_v44 = vld [vmem:[%s3847_s7] ss:$0 sm:$0xff] }
 0x284   : > { %v2100_v60 = vpop.f32.mrf.mxu1  ;;  %2315 = vmatmul.mubr.bf16.vlgmr.msra.gmra.mxu0 %v2139_v49 }
 0x285   : > { %v2101_v61 = vadd.f32 %v2100_v60, %v2028_v51  ;;  %v2129_v13 = vmax.f32 %v2099_v53, 0.0 }
 0x286   : > { %v2104_v14 = vpop.f32.mrf.mxu1 }
 0x287   : > { %v2130_v25 = vmax.f32 %v2101_v61, 0.0  ;;  %v2141_v46 = vpack.c.bf16 %v2129_v13, %v2127_v29  ;;  %v2105_v4 = vadd.f32 %v2104_v14, %v2032_v45 }
 0x288   : > { %v2106_v6 = vpop.f32.mrf.mxu1 }
 0x289   : > { %v2142_v36 = vpack.c.bf16 %v2130_v25, %v2128_v2  ;;  %v2107_v57 = vadd.f32 %v2106_v6, %v2034_v7  ;;  %v2131_v16 = vmax.f32 %v2105_v4, 0.0 }
 0x28a   : > { %v2108_v8 = vpop.f32.mrf.mxu1 }
 0x28b   : > { %v2109_v58 = vadd.f32 %v2108_v8, %v2036_v35  ;;  %2322 = vmatprep.mubr.bf16.mxu0 %v2142_v36  ;;  %v2132_v18 = vmax.f32 %v2107_v57, 0.0 }
 0x28c   : > { %v2110_v10 = vpop.f32.mrf.mxu1  ;;  %2323 = vmatmul.mubr.bf16.gmra.mxu0 %v2141_v46 }
 0x28d   : > { %v2111_v11 = vadd.f32 %v2110_v10, %v2038_v9  ;;  %v2133_v12 = vmax.f32 %v2109_v58, 0.0 }
 0x28e   : > { %v2114_v17 = vpop.f32.mrf.mxu1 }
 0x28f   : > { %v2134_v19 = vmax.f32 %v2111_v11, 0.0  ;;  %v2143_v5 = vpack.c.bf16 %v2133_v12, %v2131_v16  ;;  %v2115_v54 = vadd.f32 %v2114_v17, %v2042_v28 }
 0x290   : > { %v2116_v20 = vpop.f32.mrf.mxu1 }
 0x291   : > { %v2144_v27 = vpack.c.bf16 %v2134_v19, %v2132_v18  ;;  %v2117_v32 = vadd.f32 %v2116_v20, %v2044_v21  ;;  %v2135_v1 = vmax.f32 %v2115_v54, 0.0 }
 0x292   : > { %v2118_v30 = vpop.f32.mrf.mxu1 }
 0x293   : > { %v2119_v33 = vadd.f32 %v2118_v30, %v2046_v24  ;;  %2330 = vmatprep.mubr.bf16.mxu1 %v2144_v27  ;;  %v2136_v37 = vmax.f32 %v2117_v32, 0.0 }
 0x294   : > { %v2120_v55 = vpop.f32.mrf.mxu1  ;;  %2331 = vmatmul.mubr.bf16.vlgmr.msra.gmra.mxu1 %v2143_v5  ;;  %v2782_v5 = vld [vmem:[#allocation2] ss:$0 sm:$0xff] }
 0x295   : > { %v2121_v63 = vadd.f32 %v2120_v55, %v2048_v31  ;;  %v2137_v34 = vmax.f32 %v2119_v33, 0.0 }
 0x297   : > { %v2138_v62 = vmax.f32 %v2121_v63, 0.0  ;;  %v2145_v39 = vpack.c.bf16 %v2137_v34, %v2135_v1 }
 0x299   : > { %v2146_v38 = vpack.c.bf16 %v2138_v62, %v2136_v37 }
 0x29b   : > { %2338 = vmatprep.mubr.bf16.mxu1 %v2146_v38 }
 0x29c   : > { %2339 = vmatmul.mubr.bf16.gmra.mxu1 %v2145_v39 }
 0x344   : > { %v2811_v23 = vpop.f32.mrf.mxu0 }
 0x346   : > { %v2812_v40 = vpop.f32.mrf.mxu0 }
 0x347   : > { %v2813_v41 = vadd.f32 %v2812_v40, %v2811_v23 }
 0x348   : > { %v2814_v42 = vpop.f32.mrf.mxu0 }
 0x349   : > { %v2317_v43 = vadd.f32 %v2813_v41, %v2764_v22 }
 0x34a   : > { %v2815_v0 = vpop.f32.mrf.mxu0 }
 0x34b   : > { %v2816_v47 = vadd.f32 %v2815_v0, %v2814_v42  ;;  %v2347_v48 = vmax.f32 %v2317_v43, 0.0 }
 0x34c   : > { %v2817_v49 = vpop.f32.mrf.mxu0 }
 0x34d   : > { %v2320_v50 = vadd.f32 %v2816_v47, %v2764_v22  ;;  %v2362_v51 = vmul.f32 %v2781_v44, %v2347_v48 }
 0x34e   : > { %v2818_v52 = vpop.f32.mrf.mxu0 }
 0x34f   : > { %v2348_v53 = vmax.f32 %v2320_v50, 0.0  ;;  %v2819_v56 = vadd.f32 %v2818_v52, %v2817_v49  ;;  %2370 = vadd.xlane.f32.xlu0 %v2362_v51 }
 0x350   : > { %v2820_v59 = vpop.f32.mrf.mxu0 }
 0x351   : > { %v2363_v60 = vmul.f32 %v2781_v44, %v2348_v53  ;;  %v2325_v61 = vadd.f32 %v2819_v56, %v2764_v22 }
 0x352   : > { %v2821_v13 = vpop.f32.mrf.mxu0 }
 0x353   : > { %v2822_v14 = vadd.f32 %v2821_v13, %v2820_v59  ;;  %2372 = vadd.xlane.f32.xlu0 %v2363_v60  ;;  %v2349_v2 = vmax.f32 %v2325_v61, 0.0 }
 0x354   : > { %v2823_v25 = vpop.f32.mrf.mxu1 }
 0x355   : > { %v2328_v26 = vadd.f32 %v2822_v14, %v2764_v22  ;;  %v2364_v29 = vmul.f32 %v2781_v44, %v2349_v2 }
 0x356   : > { %v2824_v6 = vpop.f32.mrf.mxu1 }
 0x357   : > { %v2350_v7 = vmax.f32 %v2328_v26, 0.0  ;;  %v2825_v35 = vadd.f32 %v2824_v6, %v2823_v25  ;;  %2374 = vadd.xlane.f32.xlu1 %v2364_v29 }
 0x358   : > { %v2826_v36 = vpop.f32.mrf.mxu1 }
 0x359   : > { %v2333_v45 = vadd.f32 %v2825_v35, %v2764_v22  ;;  %v2365_v46 = vmul.f32 %v2781_v44, %v2350_v7 }
 0x35a   : > { %v2827_v8 = vpop.f32.mrf.mxu1 }
 0x35b   : > { %v2351_v9 = vmax.f32 %v2333_v45, 0.0  ;;  %v2828_v57 = vadd.f32 %v2827_v8, %v2826_v36  ;;  %2376 = vadd.xlane.f32.xlu1 %v2365_v46 }
 0x35c   : > { %v2829_v58 = vpop.f32.mrf.mxu1 }
 0x35d   : > { %v2336_v3 = vadd.f32 %v2828_v57, %v2764_v22  ;;  %v2366_v4 = vmul.f32 %v2781_v44, %v2351_v9 }
 0x35e   : > { %v2830_v10 = vpop.f32.mrf.mxu1 }
 0x35f   : > { %v2352_v11 = vmax.f32 %v2336_v3, 0.0  ;;  %v2831_v12 = vadd.f32 %v2830_v10, %v2829_v58  ;;  %2378 = vadd.xlane.f32.xlu0 %v2366_v4 }
 0x360   : > { %v2832_v17 = vpop.f32.mrf.mxu1 }
 0x361   : > { %v2341_v18 = vadd.f32 %v2831_v12, %v2764_v22  ;;  %v2367_v19 = vmul.f32 %v2781_v44, %v2352_v11 }
 0x362   : > { %v2833_v15 = vpop.f32.mrf.mxu1 }
 0x363   : > { %v2353_v16 = vmax.f32 %v2341_v18, 0.0  ;;  %v2834_v20 = vadd.f32 %v2833_v15, %v2832_v17  ;;  %2380 = vadd.xlane.f32.xlu1 %v2367_v19 }
 0x365   : > { %v2344_v21 = vadd.f32 %v2834_v20, %v2764_v22  ;;  %v2368_v24 = vmul.f32 %v2781_v44, %v2353_v16 }
 0x367   : > { %v2354_v27 = vmax.f32 %v2344_v21, 0.0  ;;  %2382 = vadd.xlane.f32.xlu0 %v2368_v24 }
 0x369   : > { %v2369_v28 = vmul.f32 %v2781_v44, %v2354_v27 }
 0x36b   : > { %2384 = vadd.xlane.f32.xlu1 %v2369_v28 }
 0x3d8   : > { %v2371_v30 = vpop.xlane.xlu0 %2370 }
 0x3d9   : > { %v2393_v31 = vadd.f32 %v2782_v5, %v2371_v30 }
 0x3db   : > { %v2783_v32 = vmul.f32 -1.442695, %v2393_v31 }
 0x3dc   : > { %v2373_v33 = vpop.xlane.xlu0 %2372 }
 0x3dd   : > { %3233 = vpow2.f32 %v2783_v32  ;;  %v2394_v54 = vadd.f32 %v2782_v5, %v2373_v33 }
 0x3df   : > { %v2784_v55 = vmul.f32 -1.442695, %v2394_v54 }
 0x3e0   : > { %v2375_v63 = vpop.xlane.xlu1 %2374 }
 0x3e1   : > { %3235 = vpow2.f32 %v2784_v55  ;;  %v2395_v34 = vadd.f32 %v2782_v5, %v2375_v63 }
 0x3e3   : > { %v2785_v37 = vmul.f32 -1.442695, %v2395_v34 }
 0x3e4   : > { %v2377_v62 = vpop.xlane.xlu1 %2376 }
 0x3e5   : > { %3237 = vpow2.f32 %v2785_v37  ;;  %v2396_v1 = vadd.f32 %v2782_v5, %v2377_v62 }
 0x3e7   : > { %v2786_v38 = vmul.f32 -1.442695, %v2396_v1 }
 0x3e8   : > { %v2379_v39 = vpop.xlane.xlu0 %2378 }
 0x3e9   : > { %3239 = vpow2.f32 %v2786_v38  ;;  %v2397_v23 = vadd.f32 %v2782_v5, %v2379_v39 }
 0x3ea   : > { %v3234_v40 = vpop.eup %3233 }
 0x3eb   : > { %v2425_v22 = vadd.f32 1.0, %v3234_v40  ;;  %v2787_v41 = vmul.f32 -1.442695, %v2397_v23 }
 0x3ec   : > { %v2381_v42 = vpop.xlane.xlu1 %2380 }
 0x3ed   : > { %3241 = vrcp.f32 %v2425_v22  ;;  %v2398_v43 = vadd.f32 %v2782_v5, %v2381_v42 }
 0x3ee   : > { %v3236_v0 = vpop.eup %3235  ;;  %3243 = vpow2.f32 %v2787_v41 }
 0x3ef   : > { %v2426_v44 = vadd.f32 1.0, %v3236_v0  ;;  %v2788_v47 = vmul.f32 -1.442695, %v2398_v43 }
 0x3f0   : > { %v2383_v48 = vpop.xlane.xlu0 %2382 }
 0x3f1   : > { %3245 = vrcp.f32 %v2426_v44  ;;  %v2399_v49 = vadd.f32 %v2782_v5, %v2383_v48 }
 0x3f2   : > { %v3238_v50 = vpop.eup %3237  ;;  %3247 = vpow2.f32 %v2788_v47 }
 0x3f3   : > { %v2427_v51 = vadd.f32 1.0, %v3238_v50  ;;  %v2789_v52 = vmul.f32 -1.442695, %v2399_v49 }
 0x3f4   : > { %v2385_v53 = vpop.xlane.xlu1 %2384 }
 0x3f5   : > { %3249 = vrcp.f32 %v2427_v51  ;;  %v2400_v56 = vadd.f32 %v2782_v5, %v2385_v53 }
 0x3f6   : > { %v3240_v59 = vpop.eup %3239  ;;  %3251 = vpow2.f32 %v2789_v52 }
 0x3f7   : > { %v2428_v60 = vadd.f32 1.0, %v3240_v59  ;;  %v2790_v61 = vmul.f32 -1.442695, %v2400_v56 }
 0x3f9   : > { %3253 = vrcp.f32 %v2428_v60 }
 0x3fa   : > { %v3242_v13 = vpop.eup %3241  ;;  %3255 = vpow2.f32 %v2790_v61 }
 0x3fb   : > { %v3244_v14 = vpop.eup %3243  ;;  %2450 = vst.msk [vmem:[%s3809_s25] sm:$0xff] %vm2449_vm0, %v3242_v13 }
 0x3fc   : > { %v2429_v2 = vadd.f32 1.0, %v3244_v14 }
 0x3fe   : > { %v3246_v25 = vpop.eup %3245  ;;  %3257 = vrcp.f32 %v2429_v2 }
 0x3ff   : > { %v3248_v26 = vpop.eup %3247  ;;  %2451 = vst.msk [vmem:[%s3809_s25 + $0x8] sm:$0xff] %vm2449_vm0, %v3246_v25 }
 0x400   : > { %v2430_v29 = vadd.f32 1.0, %v3248_v26 }
 0x402   : > { %v3250_v6 = vpop.eup %3249  ;;  %3259 = vrcp.f32 %v2430_v29 }
 0x403   : > { %v3252_v7 = vpop.eup %3251  ;;  %2452 = vst.msk [vmem:[%s3809_s25 + $0x10] sm:$0xff] %vm2449_vm0, %v3250_v6 }
 0x404   : > { %v2431_v35 = vadd.f32 1.0, %v3252_v7 }
 0x406   : > { %v3254_v36 = vpop.eup %3253  ;;  %3261 = vrcp.f32 %v2431_v35 }
 0x407   : > { %v3256_v45 = vpop.eup %3255  ;;  %2453 = vst.msk [vmem:[%s3809_s25 + $0x18] sm:$0xff] %vm2449_vm0, %v3254_v36 }
 0x408   : > { %v2432_v46 = vadd.f32 1.0, %v3256_v45 }
 0x40a   : > { %3263 = vrcp.f32 %v2432_v46 }
 0x40b   : > { %v3258_v8 = vpop.eup %3257 }
 0x40c   : > { %2454 = vst.msk [vmem:[%s3809_s25 + $0x20] sm:$0xff] %vm2449_vm0, %v3258_v8 }
 0x40f   : > { %v3260_v9 = vpop.eup %3259 }
 0x410   : > { %2455 = vst.msk [vmem:[%s3809_s25 + $0x28] sm:$0xff] %vm2449_vm0, %v3260_v9 }
 0x413   : > { %v3262_v57 = vpop.eup %3261 }
 0x414   : > { %2456 = vst.msk [vmem:[%s3809_s25 + $0x30] sm:$0xff] %vm2449_vm0, %v3262_v57 }
 0x417   : > { %v3264_v58 = vpop.eup %3263 }
 0x418   : > { %2457 = vst.msk [vmem:[%s3809_s25 + $0x38] sm:$0xff] %vm2449_vm0, %v3264_v58 }
 0x419 PF: > { %p23_p3 = scmp.ge.s32.totalorder %s3553_s26, 6   ;;  %s3862_s11 = smov %s3405_s12 }
 0x41a   : > { %s3863_s12 = smov %s3409_s13  ;;  %s3864_s13 = smov %s3563_s29 }
 0x41b   : > { %s3865_s14 = smov %s3553_s26  ;;  %25 = sbr.rel (!%p23_p3) target bundleno = 8 (0x8), region = 108 }
 0x420   :  { %2480 = vsyncpa [#allocation4], 1 }
 0x421   :  { %2482 = vsyncpa [#allocation4 + $0x1], 1 }
 0x422   :  { %2483 = vsyncpa [#allocation6], 1 }
 0x423   :  { %2484 = vsyncpa [#allocation9], 1 }

</bundles_post_ra>
